<compile_context>
chip_gen: v6e
topology: v6e:2x2x1
jax: 0.10.0
libtpu: 0.0.40
codegen_flags: <defaults>
</compile_context>

<pallas_src>
import math

import jax
import jax.numpy as jnp
from jax import lax
from jax.experimental import pallas as pl
from jax.experimental.pallas import tpu as pltpu

EPS = 1e-8            # eps used by OptAEGV3.normalize()
_COLS = 512           # lane-dense block width (multiple of 128)
_MAX_BLOCK_ROWS = 512  # <= 512 keeps VMEM use safe on v7x (64 MiB physical)


def _cnormalize(xr, xi):
    """normalize(z) on (real, imag) planes, fused.

    Reference: rho = |z| + eps ; out = tanh(rho) * (z+eps(1+1j)) / |z+eps(1+1j)|
    Fused:     s2 = |z+eps|^2 ; inv = rsqrt(s2) ; rho = s2*inv (== |z+eps|)
    rho differs from the reference by O(eps)=1e-8 — far inside tolerance — and
    this saves one EUP sqrt plus several VALU ops per call.
    """
    sr = xr + EPS
    si = xi + EPS
    s2 = sr * sr + si * si
    inv = lax.rsqrt(s2)
    rho = s2 * inv
    t = jnp.tanh(rho) * inv
    return t * sr, t * si


def _ctanh(xr, xi):
    """Complex tanh via tanh/sin/cos (no exp -> no overflow; 4 EUP pushes).

    t = tanh(a), s = sin(b), c = cos(b)
    tanh(a+ib) = (t + i*s*c*(1-t^2)) / (c^2 + (t*s)^2)
    """
    t = jnp.tanh(xr)
    s = jnp.sin(xi)
    c = jnp.cos(xi)
    ts = t * s
    den = c * c + ts * ts
    inv = pl.reciprocal(den, approx=True)
    inv = inv * (2.0 - den * inv)      # one Newton step: ~1e-7 rel error
    re = t * inv
    im = s * c * (1.0 - t * t) * inv
    return re, im


def _opt_aeg_kernel(p_ref, zr_ref, zi_ref, or_ref, oi_ref):
    # p_ref: (12,) f32 in SMEM:
    #   [vxr, vxi, 1+vyr, vyi, wxr, wxi, 1+wyr, wyi, afr, afi, mfr, mfi]
    vxr, vxi = p_ref[0], p_ref[1]
    vy1r, vyi = p_ref[2], p_ref[3]
    wxr, wxi = p_ref[4], p_ref[5]
    wy1r, wyi = p_ref[6], p_ref[7]
    afr, afi = p_ref[8], p_ref[9]
    mfr, mfi = p_ref[10], p_ref[11]

    zr = zr_ref[...]
    zi = zi_ref[...]

    # n = normalize(data)
    nr, ni = _cnormalize(zr, zi)

    # v = n*(1+vy)+vx ;  w = n*(1+wy)+wx   (complex scalar params)
    vr = nr * vy1r - ni * vyi + vxr
    vi = nr * vyi + ni * vy1r + vxi
    wr = nr * wy1r - ni * wyi + wxr
    wi = nr * wyi + ni * wy1r + wxi

    # dx = afactor * (v * tanh(w))
    twr, twi = _ctanh(wr, wi)
    pr = vr * twr - vi * twi
    pi = vr * twi + vi * twr
    dxr = afr * pr - afi * pi
    dxi = afr * pi + afi * pr

    # dy = mfactor * tanh(n)
    tnr, tni = _ctanh(nr, ni)
    dyr = mfr * tnr - mfi * tni
    dyi = mfr * tni + mfi * tnr

    # out = normalize(n*(1+dy)+dx)
    dyr1 = 1.0 + dyr
    fr = nr * dyr1 - ni * dyi + dxr
    fi = nr * dyi + ni * dyr1 + dxi

    outr, outi = _cnormalize(fr, fi)
    or_ref[...] = outr
    oi_ref[...] = outi


def _choose_layout(total, cols, max_block_rows):
    """Pick (rows_padded, block_rows, n_blocks) with minimal padding waste."""
    rows = -(-total // cols)
    rows8 = ((rows + 7) // 8) * 8
    nblk = -(-rows8 // max_block_rows)
    if nblk == 1 and rows8 >= 16:
        nblk = 2                      # >=2 grid steps keeps both v7x TCs busy
    if nblk > 1 and nblk % 2 == 1:
        nblk += 1                     # even grid splits cleanly across 2 cores
    block_rows = ((-(-rows8 // nblk) + 7) // 8) * 8
    rows_padded = nblk * block_rows
    return rows_padded, block_rows, nblk


@jax.jit
def opt_aeg_v3_forward(data, vx, vy, wx, wy, afactor, mfactor):
    """data: complex64 array of any shape (batch first). Returns same shape/dtype."""
    shp = data.shape
    total = math.prod(shp)
    rows_padded, block_rows, nblk = _choose_layout(total, _COLS, _MAX_BLOCK_ROWS)
    pad = rows_padded * _COLS - total

    # Split into lane-dense f32 planes (one fused elementwise pass; see header).
    zr = jnp.real(data).reshape(-1)
    zi = jnp.imag(data).reshape(-1)
    if pad:
        zr = jnp.pad(zr, (0, pad))
        zi = jnp.pad(zi, (0, pad))
    zr = zr.reshape(rows_padded, _COLS)
    zi = zi.reshape(rows_padded, _COLS)

    def _ri(z):
        zc = jnp.asarray(z, dtype=jnp.complex64).reshape(())
        return jnp.real(zc), jnp.imag(zc)

    vxr, vxi = _ri(vx)
    vyr, vyi = _ri(vy)
    wxr, wxi = _ri(wx)
    wyr, wyi = _ri(wy)
    afr, afi = _ri(afactor)
    mfr, mfi = _ri(mfactor)
    params = jnp.stack([vxr, vxi, 1.0 + vyr, vyi,
                        wxr, wxi, 1.0 + wyr, wyi,
                        afr, afi, mfr, mfi]).astype(jnp.float32)

    blk = pl.BlockSpec((block_rows, _COLS), lambda i: (i, 0))
    outr, outi = pl.pallas_call(
        _opt_aeg_kernel,
        out_shape=(
            jax.ShapeDtypeStruct((rows_padded, _COLS), jnp.float32),
            jax.ShapeDtypeStruct((rows_padded, _COLS), jnp.float32),
        ),
        grid_spec=pltpu.PrefetchScalarGridSpec(
            num_scalar_prefetch=0,
            grid=(nblk,),
            in_specs=[
                # 12 scalar params resident in SMEM for the whole kernel.
                pl.BlockSpec(memory_space=pltpu.MemorySpace.SMEM),
                blk,   # real plane
                blk,   # imag plane
            ],
            out_specs=[blk, blk],
        ),
        compiler_params=pltpu.CompilerParams(
            dimension_semantics=("parallel",),
            vmem_limit_bytes=48 * 1024 * 1024,
            allow_input_fusion=[False, True, True],
        ),
    )(params, zr, zi)

    out = lax.complex(outr, outi).reshape(-1)[:total].reshape(shp)
    return out


def _reference(data, vx, vy, wx, wy, afactor, mfactor):
    """Pure-JAX mirror of the PyTorch OptAEGV3.forward (use_sparse=False)."""
    shp = data.shape
    b = shp[0]
    data_flat = data.reshape(b, -1)

    def normalize(z):
        rho = jnp.abs(z) + EPS
        theta = jnp.arctan2(jnp.imag(z) + EPS, jnp.real(z) + EPS)
        unit = jnp.cos(theta) + 1j * jnp.sin(theta)
        return jnp.tanh(rho) * unit

    def flow(dx, dy, x):
        return x * (1 + dy) + dx

    data_norm = normalize(data_flat)
    view = data_norm.reshape(b, data_norm.shape[1], 1)
    v = flow(vx, vy, view)
    w = flow(wx, wy, view)
    dx = afactor * (v * jnp.tanh(w)).squeeze(-1)
    dy = mfactor * jnp.tanh(data_norm)
    data_flow = flow(dx, dy, data_norm)
    data_final = normalize(data_flow)
    return data_final.reshape(shp)


if __name__ == "__main__":
    key = jax.random.PRNGKey(0)
    B, C, H, W = 2, 4, 16, 16
    keys = jax.random.split(key, 14)

    data = lax.complex(
        jax.random.normal(keys[0], (B, C, H, W), dtype=jnp.float32),
        jax.random.normal(keys[1], (B, C, H, W), dtype=jnp.float32),
    ).astype(jnp.complex64)

    def cparam(kr, ki, shape):
        # mirrors th.rand(..., dtype=complex64) / 100
        return lax.complex(
            jax.random.uniform(kr, shape, dtype=jnp.float32) / 100.0,
            jax.random.uniform(ki, shape, dtype=jnp.float32) / 100.0,
        ).astype(jnp.complex64)

    vx = cparam(keys[2], keys[3], (1, 1, 1))
    vy = cparam(keys[4], keys[5], (1, 1, 1))
    wx = cparam(keys[6], keys[7], (1, 1, 1))
    wy = cparam(keys[8], keys[9], (1, 1, 1))
    afactor = cparam(keys[10], keys[11], (1, 1))
    mfactor = cparam(keys[12], keys[13], (1, 1))

    out = opt_aeg_v3_forward(data, vx, vy, wx, wy, afactor, mfactor)
    out = jax.block_until_ready(out)

    ref = _reference(data, vx, vy, wx, wy, afactor, mfactor)
    assert out.shape == data.shape
    assert out.dtype == jnp.complex64
    max_err = float(jnp.max(jnp.abs(out - ref)))
    assert jnp.allclose(out, ref, atol=1e-4, rtol=1e-4), (
        f"mismatch vs reference, max |err| = {max_err}")
    print("KERNEL_OK")
</pallas_src>

<mosaic_0001>
module attributes {stable_mosaic.version = 11 : i64} {
  func.func @_opt_aeg_kernel(%arg0: i32, %arg1: memref<12xf32, #tpu.memory_space<smem>>, %arg2: memref<8x512xf32, #tpu.memory_space<vmem>>, %arg3: memref<8x512xf32, #tpu.memory_space<vmem>>, %arg4: memref<8x512xf32, #tpu.memory_space<vmem>>, %arg5: memref<8x512xf32, #tpu.memory_space<vmem>>) attributes {dimension_semantics = [#tpu.dimension_semantics<parallel>], iteration_bounds = array<i64: 1>, scalar_prefetch = 0 : i64, scratch_operands = 0 : i64, tpu.core_type = #tpu.core_type<tc>, window_params = [{transform_indices = @transform_0, window_bounds = array<i64: 12>}, {transform_indices = @transform_1, window_bounds = array<i64: 8, 512>}, {transform_indices = @transform_2, window_bounds = array<i64: 8, 512>}, {transform_indices = @transform_3, window_bounds = array<i64: 8, 512>}, {transform_indices = @transform_4, window_bounds = array<i64: 8, 512>}]} {
    %c0 = arith.constant 0 : index
    %0 = memref.load %arg1[%c0] : memref<12xf32, #tpu.memory_space<smem>>
    %c1 = arith.constant 1 : index
    %1 = memref.load %arg1[%c1] : memref<12xf32, #tpu.memory_space<smem>>
    %c2 = arith.constant 2 : index
    %2 = memref.load %arg1[%c2] : memref<12xf32, #tpu.memory_space<smem>>
    %c3 = arith.constant 3 : index
    %3 = memref.load %arg1[%c3] : memref<12xf32, #tpu.memory_space<smem>>
    %c4 = arith.constant 4 : index
    %4 = memref.load %arg1[%c4] : memref<12xf32, #tpu.memory_space<smem>>
    %c5 = arith.constant 5 : index
    %5 = memref.load %arg1[%c5] : memref<12xf32, #tpu.memory_space<smem>>
    %c6 = arith.constant 6 : index
    %6 = memref.load %arg1[%c6] : memref<12xf32, #tpu.memory_space<smem>>
    %c7 = arith.constant 7 : index
    %7 = memref.load %arg1[%c7] : memref<12xf32, #tpu.memory_space<smem>>
    %c8 = arith.constant 8 : index
    %8 = memref.load %arg1[%c8] : memref<12xf32, #tpu.memory_space<smem>>
    %c9 = arith.constant 9 : index
    %9 = memref.load %arg1[%c9] : memref<12xf32, #tpu.memory_space<smem>>
    %c10 = arith.constant 10 : index
    %10 = memref.load %arg1[%c10] : memref<12xf32, #tpu.memory_space<smem>>
    %c11 = arith.constant 11 : index
    %11 = memref.load %arg1[%c11] : memref<12xf32, #tpu.memory_space<smem>>
    %c0_0 = arith.constant 0 : index
    %c0_1 = arith.constant 0 : index
    %12 = vector.load %arg2[%c0_0, %c0_1] : memref<8x512xf32, #tpu.memory_space<vmem>>, vector<8x512xf32>
    %c0_2 = arith.constant 0 : index
    %c0_3 = arith.constant 0 : index
    %13 = vector.load %arg3[%c0_2, %c0_3] : memref<8x512xf32, #tpu.memory_space<vmem>>, vector<8x512xf32>
    %cst = arith.constant 9.99999993E-9 : f32
    %14 = vector.broadcast %cst : f32 to vector<8x512xf32>
    %15 = arith.addf %12, %14 : vector<8x512xf32>
    %cst_4 = arith.constant 9.99999993E-9 : f32
    %16 = vector.broadcast %cst_4 : f32 to vector<8x512xf32>
    %17 = arith.addf %13, %16 : vector<8x512xf32>
    %18 = arith.mulf %15, %15 : vector<8x512xf32>
    %19 = arith.mulf %17, %17 : vector<8x512xf32>
    %20 = arith.addf %18, %19 : vector<8x512xf32>
    %21 = math.rsqrt %20 : vector<8x512xf32>
    %22 = arith.mulf %20, %21 : vector<8x512xf32>
    %23 = math.tanh %22 : vector<8x512xf32>
    %24 = arith.mulf %23, %21 : vector<8x512xf32>
    %25 = arith.mulf %24, %15 : vector<8x512xf32>
    %26 = arith.mulf %24, %17 : vector<8x512xf32>
    %27 = vector.broadcast %2 : f32 to vector<8x512xf32>
    %28 = arith.mulf %25, %27 : vector<8x512xf32>
    %29 = vector.broadcast %3 : f32 to vector<8x512xf32>
    %30 = arith.mulf %26, %29 : vector<8x512xf32>
    %31 = arith.subf %28, %30 : vector<8x512xf32>
    %32 = vector.broadcast %0 : f32 to vector<8x512xf32>
    %33 = arith.addf %31, %32 : vector<8x512xf32>
    %34 = vector.broadcast %3 : f32 to vector<8x512xf32>
    %35 = arith.mulf %25, %34 : vector<8x512xf32>
    %36 = vector.broadcast %2 : f32 to vector<8x512xf32>
    %37 = arith.mulf %26, %36 : vector<8x512xf32>
    %38 = arith.addf %35, %37 : vector<8x512xf32>
    %39 = vector.broadcast %1 : f32 to vector<8x512xf32>
    %40 = arith.addf %38, %39 : vector<8x512xf32>
    %41 = vector.broadcast %6 : f32 to vector<8x512xf32>
    %42 = arith.mulf %25, %41 : vector<8x512xf32>
    %43 = vector.broadcast %7 : f32 to vector<8x512xf32>
    %44 = arith.mulf %26, %43 : vector<8x512xf32>
    %45 = arith.subf %42, %44 : vector<8x512xf32>
    %46 = vector.broadcast %4 : f32 to vector<8x512xf32>
    %47 = arith.addf %45, %46 : vector<8x512xf32>
    %48 = vector.broadcast %7 : f32 to vector<8x512xf32>
    %49 = arith.mulf %25, %48 : vector<8x512xf32>
    %50 = vector.broadcast %6 : f32 to vector<8x512xf32>
    %51 = arith.mulf %26, %50 : vector<8x512xf32>
    %52 = arith.addf %49, %51 : vector<8x512xf32>
    %53 = vector.broadcast %5 : f32 to vector<8x512xf32>
    %54 = arith.addf %52, %53 : vector<8x512xf32>
    %55 = math.tanh %47 : vector<8x512xf32>
    %56 = math.sin %54 : vector<8x512xf32>
    %57 = math.cos %54 : vector<8x512xf32>
    %58 = arith.mulf %55, %56 : vector<8x512xf32>
    %59 = arith.mulf %57, %57 : vector<8x512xf32>
    %60 = arith.mulf %58, %58 : vector<8x512xf32>
    %61 = arith.addf %59, %60 : vector<8x512xf32>
    %62 = tpu.reciprocal %61 {approx = true} : vector<8x512xf32> -> vector<8x512xf32>
    %63 = arith.mulf %61, %62 : vector<8x512xf32>
    %cst_5 = arith.constant 2.000000e+00 : f32
    %64 = vector.broadcast %cst_5 : f32 to vector<8x512xf32>
    %65 = arith.subf %64, %63 : vector<8x512xf32>
    %66 = arith.mulf %62, %65 : vector<8x512xf32>
    %67 = arith.mulf %55, %66 : vector<8x512xf32>
    %68 = arith.mulf %56, %57 : vector<8x512xf32>
    %69 = arith.mulf %55, %55 : vector<8x512xf32>
    %cst_6 = arith.constant 1.000000e+00 : f32
    %70 = vector.broadcast %cst_6 : f32 to vector<8x512xf32>
    %71 = arith.subf %70, %69 : vector<8x512xf32>
    %72 = arith.mulf %68, %71 : vector<8x512xf32>
    %73 = arith.mulf %72, %66 : vector<8x512xf32>
    %74 = arith.mulf %33, %67 : vector<8x512xf32>
    %75 = arith.mulf %40, %73 : vector<8x512xf32>
    %76 = arith.subf %74, %75 : vector<8x512xf32>
    %77 = arith.mulf %33, %73 : vector<8x512xf32>
    %78 = arith.mulf %40, %67 : vector<8x512xf32>
    %79 = arith.addf %77, %78 : vector<8x512xf32>
    %80 = vector.broadcast %8 : f32 to vector<8x512xf32>
    %81 = arith.mulf %80, %76 : vector<8x512xf32>
    %82 = vector.broadcast %9 : f32 to vector<8x512xf32>
    %83 = arith.mulf %82, %79 : vector<8x512xf32>
    %84 = arith.subf %81, %83 : vector<8x512xf32>
    %85 = vector.broadcast %8 : f32 to vector<8x512xf32>
    %86 = arith.mulf %85, %79 : vector<8x512xf32>
    %87 = vector.broadcast %9 : f32 to vector<8x512xf32>
    %88 = arith.mulf %87, %76 : vector<8x512xf32>
    %89 = arith.addf %86, %88 : vector<8x512xf32>
    %90 = math.tanh %25 : vector<8x512xf32>
    %91 = math.sin %26 : vector<8x512xf32>
    %92 = math.cos %26 : vector<8x512xf32>
    %93 = arith.mulf %90, %91 : vector<8x512xf32>
    %94 = arith.mulf %92, %92 : vector<8x512xf32>
    %95 = arith.mulf %93, %93 : vector<8x512xf32>
    %96 = arith.addf %94, %95 : vector<8x512xf32>
    %97 = tpu.reciprocal %96 {approx = true} : vector<8x512xf32> -> vector<8x512xf32>
    %98 = arith.mulf %96, %97 : vector<8x512xf32>
    %cst_7 = arith.constant 2.000000e+00 : f32
    %99 = vector.broadcast %cst_7 : f32 to vector<8x512xf32>
    %100 = arith.subf %99, %98 : vector<8x512xf32>
    %101 = arith.mulf %97, %100 : vector<8x512xf32>
    %102 = arith.mulf %90, %101 : vector<8x512xf32>
    %103 = arith.mulf %91, %92 : vector<8x512xf32>
    %104 = arith.mulf %90, %90 : vector<8x512xf32>
    %cst_8 = arith.constant 1.000000e+00 : f32
    %105 = vector.broadcast %cst_8 : f32 to vector<8x512xf32>
    %106 = arith.subf %105, %104 : vector<8x512xf32>
    %107 = arith.mulf %103, %106 : vector<8x512xf32>
    %108 = arith.mulf %107, %101 : vector<8x512xf32>
    %109 = vector.broadcast %10 : f32 to vector<8x512xf32>
    %110 = arith.mulf %109, %102 : vector<8x512xf32>
    %111 = vector.broadcast %11 : f32 to vector<8x512xf32>
    %112 = arith.mulf %111, %108 : vector<8x512xf32>
    %113 = arith.subf %110, %112 : vector<8x512xf32>
    %114 = vector.broadcast %10 : f32 to vector<8x512xf32>
    %115 = arith.mulf %114, %108 : vector<8x512xf32>
    %116 = vector.broadcast %11 : f32 to vector<8x512xf32>
    %117 = arith.mulf %116, %102 : vector<8x512xf32>
    %118 = arith.addf %115, %117 : vector<8x512xf32>
    %cst_9 = arith.constant 1.000000e+00 : f32
    %119 = vector.broadcast %cst_9 : f32 to vector<8x512xf32>
    %120 = arith.addf %119, %113 : vector<8x512xf32>
    %121 = arith.mulf %25, %120 : vector<8x512xf32>
    %122 = arith.mulf %26, %118 : vector<8x512xf32>
    %123 = arith.subf %121, %122 : vector<8x512xf32>
    %124 = arith.addf %123, %84 : vector<8x512xf32>
    %125 = arith.mulf %25, %118 : vector<8x512xf32>
    %126 = arith.mulf %26, %120 : vector<8x512xf32>
    %127 = arith.addf %125, %126 : vector<8x512xf32>
    %128 = arith.addf %127, %89 : vector<8x512xf32>
    %cst_10 = arith.constant 9.99999993E-9 : f32
    %129 = vector.broadcast %cst_10 : f32 to vector<8x512xf32>
    %130 = arith.addf %124, %129 : vector<8x512xf32>
    %cst_11 = arith.constant 9.99999993E-9 : f32
    %131 = vector.broadcast %cst_11 : f32 to vector<8x512xf32>
    %132 = arith.addf %128, %131 : vector<8x512xf32>
    %133 = arith.mulf %130, %130 : vector<8x512xf32>
    %134 = arith.mulf %132, %132 : vector<8x512xf32>
    %135 = arith.addf %133, %134 : vector<8x512xf32>
    %136 = math.rsqrt %135 : vector<8x512xf32>
    %137 = arith.mulf %135, %136 : vector<8x512xf32>
    %138 = math.tanh %137 : vector<8x512xf32>
    %139 = arith.mulf %138, %136 : vector<8x512xf32>
    %140 = arith.mulf %139, %130 : vector<8x512xf32>
    %141 = arith.mulf %139, %132 : vector<8x512xf32>
    %c0_12 = arith.constant 0 : index
    %c0_13 = arith.constant 0 : index
    %142 = vector.load %arg4[%c0_12, %c0_13] : memref<8x512xf32, #tpu.memory_space<vmem>>, vector<8x512xf32>
    tpu.vector_store %arg4[%c0_12, %c0_13], %140 {strides = array<i32>} : memref<8x512xf32, #tpu.memory_space<vmem>>, vector<8x512xf32>,
    %c0_14 = arith.constant 0 : index
    %c0_15 = arith.constant 0 : index
    %143 = vector.load %arg5[%c0_14, %c0_15] : memref<8x512xf32, #tpu.memory_space<vmem>>, vector<8x512xf32>
    tpu.vector_store %arg5[%c0_14, %c0_15], %141 {strides = array<i32>} : memref<8x512xf32, #tpu.memory_space<vmem>>, vector<8x512xf32>,
    return
  }
  func.func @transform_0(%arg0: i32) -> i32 {
    %c0_i32 = arith.constant 0 : i32
    %c0_i32_0 = arith.constant 0 : i32
    return %c0_i32 : i32
  }
  func.func @transform_1(%arg0: i32) -> (i32, i32) {
    %c0_i32 = arith.constant 0 : i32
    %c0_i32_0 = arith.constant 0 : i32
    return %arg0, %c0_i32 : i32, i32
  }
  func.func @transform_2(%arg0: i32) -> (i32, i32) {
    %c0_i32 = arith.constant 0 : i32
    %c0_i32_0 = arith.constant 0 : i32
    return %arg0, %c0_i32 : i32, i32
  }
  func.func @transform_3(%arg0: i32) -> (i32, i32) {
    %c0_i32 = arith.constant 0 : i32
    %c0_i32_0 = arith.constant 0 : i32
    return %arg0, %c0_i32 : i32, i32
  }
  func.func @transform_4(%arg0: i32) -> (i32, i32) {
    %c0_i32 = arith.constant 0 : i32
    %c0_i32_0 = arith.constant 0 : i32
    return %arg0, %c0_i32 : i32, i32
  }
}

</mosaic_0001>

<bundles_post_ra>
// kernel: custom-call.10
= control target key start
LH: loop header
LB: loop body
LE: loop exit
PB: predicated region body
PF: predicated region fallthrough
CT: control target
= control target key end

     0   :  { %2 = vsyncpa [#allocation2], 0  ;;  %s83_s0 = inlined_call_operand.hbm [shape: c64[1,1], index: 0, kind: input, shape index: {}]   ;;  %s84_s1 = inlined_call_operand.hbm [shape: f32[1,1], index: 1, kind: output, shape index: {}]  }
   0x1   :  { %3 = vsyncpa [#allocation1], 0  ;;  %s65_s6 = smov [#allocation3]  }
   0x2   :  { %s4_s7 = sshll.u32 %s65_s6, 4  ;;  %s5_s7 = int_to_ptr.vmem [resolvable:$true] %s4_s7 }
   0x3   :  { %s29_s8 = scalar_lea.vmem %s5_s7, 16  ;;  %s33_s9 = scalar_lea.vmem %s5_s7, 32 }
   0x4   :  { %p30_p0 = scmp.ne.s32.totalorder %s5_s7, %s29_s8  ;;  %p34_p1 = scmp.lt.s32.totalorder %s5_s7, %s5_s7 }
   0x5   :  { %p35_p2 = scmp.lt.s32.totalorder %s33_s9, %s29_s8 }
   0x7   :  { %p36_p3 = por %p35_p2, %p34_p1 }
   0x9   :  { %p37_p4 = pnand %p36_p3, %p30_p0 }
   0xb   :  { %40 = shalt.err (!%p37_p4)  }
   0xc   :  { %7 = dma.hbm_to_vmem [thread:$0]  %s83_s0, 16, %s5_s7, [#allocation1] }
   0xd   :  { %61 = dma.done.wait [#allocation1], 16  }
   0xe   :  { %62 = vsyncadd [#allocation1], 4294967280  ;;  %s66_s12 = smov [#allocation0]   ;;  %vm10_vm0 = vcmask 1040384   ;;  %v9_v0 = vld [vmem:[#allocation3] sm:$0x1] }
   0xf   :  { %s12_s13 = sshll.u32 %s66_s12, 4  ;;  %11 = vst.msk [vmem:[#allocation0] sm:$0xff] %vm10_vm0, %v9_v0  ;;  %s13_s13 = int_to_ptr.vmem [resolvable:$true] %s12_s13 }
  0x10   :  { %s41_s14 = scalar_lea.vmem %s13_s13, 16  ;;  %s45_s15 = scalar_lea.vmem %s13_s13, 32 }
  0x11   :  { %p42_p5 = scmp.ne.s32.totalorder %s13_s13, %s41_s14  ;;  %p46_p6 = scmp.lt.s32.totalorder %s13_s13, %s13_s13 }
  0x12   :  { %p47_p7 = scmp.lt.s32.totalorder %s45_s15, %s41_s14 }
  0x14   :  { %p48_p8 = por %p47_p7, %p46_p6 }
  0x16   :  { %p49_p9 = pnand %p48_p8, %p42_p5 }
  0x18   :  { %52 = shalt.err (!%p49_p9)  }
  0x19   :  { %15 = dma.vmem_to_hbm [thread:$0]  %s13_s13, 16, %s84_s1, [#allocation2] }
  0x1a   :  { %63 = dma.done.wait [#allocation2], 16  }
  0x1b   :  { %64 = vsyncadd [#allocation2], 4294967280 }
  0x1c   :  { %17 = vsyncpa [#allocation1], 1 }
  0x1d   :  { %18 = vsyncpa [#allocation2], 1 }

// kernel: custom-call.6
= control target key start
LH: loop header
LB: loop body
LE: loop exit
PB: predicated region body
PF: predicated region fallthrough
CT: control target
= control target key end

     0   :  { %2 = vsyncpa [#allocation2], 0  ;;  %s83_s0 = inlined_call_operand.hbm [shape: c64[1,1,1], index: 0, kind: input, shape index: {}]   ;;  %s84_s1 = inlined_call_operand.hbm [shape: f32[1,1,1], index: 1, kind: output, shape index: {}]  }
   0x1   :  { %3 = vsyncpa [#allocation1], 0  ;;  %s65_s6 = smov [#allocation3]  }
   0x2   :  { %s4_s7 = sshll.u32 %s65_s6, 4  ;;  %s5_s7 = int_to_ptr.vmem [resolvable:$true] %s4_s7 }
   0x3   :  { %s29_s8 = scalar_lea.vmem %s5_s7, 16  ;;  %s33_s9 = scalar_lea.vmem %s5_s7, 32 }
   0x4   :  { %p30_p0 = scmp.ne.s32.totalorder %s5_s7, %s29_s8  ;;  %p34_p1 = scmp.lt.s32.totalorder %s5_s7, %s5_s7 }
   0x5   :  { %p35_p2 = scmp.lt.s32.totalorder %s33_s9, %s29_s8 }
   0x7   :  { %p36_p3 = por %p35_p2, %p34_p1 }
   0x9   :  { %p37_p4 = pnand %p36_p3, %p30_p0 }
   0xb   :  { %40 = shalt.err (!%p37_p4)  }
   0xc   :  { %7 = dma.hbm_to_vmem [thread:$0]  %s83_s0, 16, %s5_s7, [#allocation1] }
   0xd   :  { %61 = dma.done.wait [#allocation1], 16  }
   0xe   :  { %62 = vsyncadd [#allocation1], 4294967280  ;;  %s66_s12 = smov [#allocation0]   ;;  %vm10_vm0 = vcmask 1040384   ;;  %v9_v0 = vld [vmem:[#allocation3] sm:$0x1] }
   0xf   :  { %s12_s13 = sshll.u32 %s66_s12, 4  ;;  %11 = vst.msk [vmem:[#allocation0] sm:$0xff] %vm10_vm0, %v9_v0  ;;  %s13_s13 = int_to_ptr.vmem [resolvable:$true] %s12_s13 }
  0x10   :  { %s41_s14 = scalar_lea.vmem %s13_s13, 16  ;;  %s45_s15 = scalar_lea.vmem %s13_s13, 32 }
  0x11   :  { %p42_p5 = scmp.ne.s32.totalorder %s13_s13, %s41_s14  ;;  %p46_p6 = scmp.lt.s32.totalorder %s13_s13, %s13_s13 }
  0x12   :  { %p47_p7 = scmp.lt.s32.totalorder %s45_s15, %s41_s14 }
  0x14   :  { %p48_p8 = por %p47_p7, %p46_p6 }
  0x16   :  { %p49_p9 = pnand %p48_p8, %p42_p5 }
  0x18   :  { %52 = shalt.err (!%p49_p9)  }
  0x19   :  { %15 = dma.vmem_to_hbm [thread:$0]  %s13_s13, 16, %s84_s1, [#allocation2] }
  0x1a   :  { %63 = dma.done.wait [#allocation2], 16  }
  0x1b   :  { %64 = vsyncadd [#allocation2], 4294967280 }
  0x1c   :  { %17 = vsyncpa [#allocation1], 1 }
  0x1d   :  { %18 = vsyncpa [#allocation2], 1 }

// kernel: custom-call.11
= control target key start
LH: loop header
LB: loop body
LE: loop exit
PB: predicated region body
PF: predicated region fallthrough
CT: control target
= control target key end

     0   :  { %s87_s0 = inlined_call_operand.hbm [shape: c64[1,1], index: 0, kind: input, shape index: {}]   ;;  %s88_s1 = inlined_call_operand.hbm [shape: f32[1,1], index: 1, kind: output, shape index: {}]  }
   0x1   :  { %s2_s8 = scalar_lea.hbm %s87_s0, 16 }
   0x2   :  { %3 = vsyncpa [#allocation2], 0 }
   0x3   :  { %4 = vsyncpa [#allocation1], 0  ;;  %s69_s9 = smov [#allocation3]  }
   0x4   :  { %s5_s10 = sshll.u32 %s69_s9, 4  ;;  %s6_s10 = int_to_ptr.vmem [resolvable:$true] %s5_s10 }
   0x5   :  { %s32_s11 = scalar_lea.vmem %s6_s10, 16  ;;  %s36_s12 = scalar_lea.vmem %s6_s10, 32 }
   0x6   :  { %p33_p0 = scmp.ne.s32.totalorder %s6_s10, %s32_s11  ;;  %p37_p1 = scmp.lt.s32.totalorder %s6_s10, %s6_s10 }
   0x7   :  { %p38_p2 = scmp.lt.s32.totalorder %s36_s12, %s32_s11 }
   0x9   :  { %p39_p3 = por %p38_p2, %p37_p1 }
   0xb   :  { %p40_p4 = pnand %p39_p3, %p33_p0 }
   0xd   :  { %43 = shalt.err (!%p40_p4)  }
   0xe   :  { %8 = dma.hbm_to_vmem [thread:$0]  %s2_s8, 16, %s6_s10, [#allocation1] }
   0xf   :  { %65 = dma.done.wait [#allocation1], 16  }
  0x10   :  { %66 = vsyncadd [#allocation1], 4294967280  ;;  %s70_s13 = smov [#allocation0]   ;;  %vm11_vm0 = vcmask 1040384   ;;  %v10_v0 = vld [vmem:[#allocation3] sm:$0x1] }
  0x11   :  { %s13_s14 = sshll.u32 %s70_s13, 4  ;;  %12 = vst.msk [vmem:[#allocation0] sm:$0xff] %vm11_vm0, %v10_v0  ;;  %s14_s14 = int_to_ptr.vmem [resolvable:$true] %s13_s14 }
  0x12   :  { %s45_s0 = scalar_lea.vmem %s14_s14, 16  ;;  %s49_s15 = scalar_lea.vmem %s14_s14, 32 }
  0x13   :  { %p46_p5 = scmp.ne.s32.totalorder %s14_s14, %s45_s0  ;;  %p50_p6 = scmp.lt.s32.totalorder %s14_s14, %s14_s14 }
  0x14   :  { %p51_p7 = scmp.lt.s32.totalorder %s49_s15, %s45_s0 }
  0x16   :  { %p52_p8 = por %p51_p7, %p50_p6 }
  0x18   :  { %p53_p9 = pnand %p52_p8, %p46_p5 }
  0x1a   :  { %56 = shalt.err (!%p53_p9)  }
  0x1b   :  { %16 = dma.vmem_to_hbm [thread:$0]  %s14_s14, 16, %s88_s1, [#allocation2] }
  0x1c   :  { %67 = dma.done.wait [#allocation2], 16  }
  0x1d   :  { %68 = vsyncadd [#allocation2], 4294967280 }
  0x1e   :  { %18 = vsyncpa [#allocation1], 1 }
  0x1f   :  { %19 = vsyncpa [#allocation2], 1 }

// kernel: custom-call.7
= control target key start
LH: loop header
LB: loop body
LE: loop exit
PB: predicated region body
PF: predicated region fallthrough
CT: control target
= control target key end

     0   :  { %s87_s0 = inlined_call_operand.hbm [shape: c64[1,1,1], index: 0, kind: input, shape index: {}]   ;;  %s88_s1 = inlined_call_operand.hbm [shape: f32[1,1,1], index: 1, kind: output, shape index: {}]  }
   0x1   :  { %s2_s8 = scalar_lea.hbm %s87_s0, 16 }
   0x2   :  { %3 = vsyncpa [#allocation2], 0 }
   0x3   :  { %4 = vsyncpa [#allocation1], 0  ;;  %s69_s9 = smov [#allocation3]  }
   0x4   :  { %s5_s10 = sshll.u32 %s69_s9, 4  ;;  %s6_s10 = int_to_ptr.vmem [resolvable:$true] %s5_s10 }
   0x5   :  { %s32_s11 = scalar_lea.vmem %s6_s10, 16  ;;  %s36_s12 = scalar_lea.vmem %s6_s10, 32 }
   0x6   :  { %p33_p0 = scmp.ne.s32.totalorder %s6_s10, %s32_s11  ;;  %p37_p1 = scmp.lt.s32.totalorder %s6_s10, %s6_s10 }
   0x7   :  { %p38_p2 = scmp.lt.s32.totalorder %s36_s12, %s32_s11 }
   0x9   :  { %p39_p3 = por %p38_p2, %p37_p1 }
   0xb   :  { %p40_p4 = pnand %p39_p3, %p33_p0 }
   0xd   :  { %43 = shalt.err (!%p40_p4)  }
   0xe   :  { %8 = dma.hbm_to_vmem [thread:$0]  %s2_s8, 16, %s6_s10, [#allocation1] }
   0xf   :  { %65 = dma.done.wait [#allocation1], 16  }
  0x10   :  { %66 = vsyncadd [#allocation1], 4294967280  ;;  %s70_s13 = smov [#allocation0]   ;;  %vm11_vm0 = vcmask 1040384   ;;  %v10_v0 = vld [vmem:[#allocation3] sm:$0x1] }
  0x11   :  { %s13_s14 = sshll.u32 %s70_s13, 4  ;;  %12 = vst.msk [vmem:[#allocation0] sm:$0xff] %vm11_vm0, %v10_v0  ;;  %s14_s14 = int_to_ptr.vmem [resolvable:$true] %s13_s14 }
  0x12   :  { %s45_s0 = scalar_lea.vmem %s14_s14, 16  ;;  %s49_s15 = scalar_lea.vmem %s14_s14, 32 }
  0x13   :  { %p46_p5 = scmp.ne.s32.totalorder %s14_s14, %s45_s0  ;;  %p50_p6 = scmp.lt.s32.totalorder %s14_s14, %s14_s14 }
  0x14   :  { %p51_p7 = scmp.lt.s32.totalorder %s49_s15, %s45_s0 }
  0x16   :  { %p52_p8 = por %p51_p7, %p50_p6 }
  0x18   :  { %p53_p9 = pnand %p52_p8, %p46_p5 }
  0x1a   :  { %56 = shalt.err (!%p53_p9)  }
  0x1b   :  { %16 = dma.vmem_to_hbm [thread:$0]  %s14_s14, 16, %s88_s1, [#allocation2] }
  0x1c   :  { %67 = dma.done.wait [#allocation2], 16  }
  0x1d   :  { %68 = vsyncadd [#allocation2], 4294967280 }
  0x1e   :  { %18 = vsyncpa [#allocation1], 1 }
  0x1f   :  { %19 = vsyncpa [#allocation2], 1 }

// kernel: custom-call.13
= control target key start
LH: loop header
LB: loop body
LE: loop exit
PB: predicated region body
PF: predicated region fallthrough
CT: control target
= control target key end

     0   :  { %s51_s0 = inlined_call_operand.hbm [shape: c64[2,4,16,16], index: 0, kind: input, shape index: {}]   ;;  %s52_s1 = inlined_call_operand.vmem [shape: f32[2,4,16,16], index: 1, kind: output, shape index: {}]  }
   0x1   :  { %s2_s8 = scalar_lea.hbm %s51_s0, 2048 }
   0x2   :  { %3 = vsyncpa [#allocation0], 0  ;;  %s4_s11 = sshll.u32 %s52_s1, 4  ;;  %s5_s11 = int_to_ptr.vmem [resolvable:$true] %s4_s11 }
   0x3   :  { %s20_s12 = scalar_lea.vmem %s5_s11, 2048  ;;  %p25_p1 = scmp.lt.s32.totalorder %s5_s11, %s5_s11 }
   0x4   :  { %p21_p0 = scmp.ne.s32.totalorder %s5_s11, %s20_s12  ;;  %p26_p2 = scmp.lt.s32.totalorder %s20_s12, %s20_s12 }
   0x6   :  { %p27_p3 = por %p26_p2, %p25_p1 }
   0x8   :  { %p28_p4 = pnand %p27_p3, %p21_p0 }
   0xa   :  { %31 = shalt.err (!%p28_p4)  }
   0xb   :  { %7 = dma.hbm_to_vmem [thread:$0]  %s2_s8, 2048, %s5_s11, [#allocation0] }
   0xc   :  { %33 = dma.done.wait [#allocation0], 2048  }
   0xd   :  { %34 = vsyncadd [#allocation0], 4294965248 }
   0xe   :  { %9 = vsyncpa [#allocation0], 1 }

// kernel: custom-call.12
= control target key start
LH: loop header
LB: loop body
LE: loop exit
PB: predicated region body
PF: predicated region fallthrough
CT: control target
= control target key end

     0   :  { %2 = vsyncpa [#allocation0], 0  ;;  %s47_s0 = inlined_call_operand.hbm [shape: c64[2,4,16,16], index: 0, kind: input, shape index: {}]   ;;  %s48_s1 = inlined_call_operand.vmem [shape: f32[2,4,16,16], index: 1, kind: output, shape index: {}]  }
   0x1   :  { %s3_s8 = sshll.u32 %s48_s1, 4  ;;  %s4_s8 = int_to_ptr.vmem [resolvable:$true] %s3_s8 }
   0x2   :  { %s17_s9 = scalar_lea.vmem %s4_s8, 2048  ;;  %p22_p1 = scmp.lt.s32.totalorder %s4_s8, %s4_s8 }
   0x3   :  { %p18_p0 = scmp.ne.s32.totalorder %s4_s8, %s17_s9  ;;  %p23_p2 = scmp.lt.s32.totalorder %s17_s9, %s17_s9 }
   0x5   :  { %p24_p3 = por %p23_p2, %p22_p1 }
   0x7   :  { %p25_p4 = pnand %p24_p3, %p18_p0 }
   0x9   :  { %28 = shalt.err (!%p25_p4)  }
   0xa   :  { %6 = dma.hbm_to_vmem [thread:$0]  %s47_s0, 2048, %s4_s8, [#allocation0] }
   0xb   :  { %29 = dma.done.wait [#allocation0], 2048  }
   0xc   :  { %30 = vsyncadd [#allocation0], 4294965248 }
   0xd   :  { %8 = vsyncpa [#allocation0], 1 }

// kernel: custom-call.14
= control target key start
LH: loop header
LB: loop body
LE: loop exit
PB: predicated region body
PF: predicated region fallthrough
CT: control target
= control target key end

     0   :  { %s92_s0 = inlined_call_operand.vmem [shape: f32[2,4,16,16], index: 0, kind: input, shape index: {}]   ;;  %s93_s1 = inlined_call_operand.vmem [shape: f32[2,4,16,16], index: 1, kind: input, shape index: {}]   ;;  %s94_s2 = inlined_call_operand.hbm [shape: c64[2,4,16,16], index: 2, kind: output, shape index: {}]  }
   0x1   :  { %s3_s11 = scalar_lea.hbm %s94_s2, 2048 }
   0x2   :  { %4 = vsyncpa [#allocation0], 0  ;;  %s5_s14 = sshll.u32 %s92_s0, 4  ;;  %s6_s14 = int_to_ptr.vmem [resolvable:$true] %s5_s14 }
   0x3   :  { %s18_s15 = scalar_lea.vmem %s6_s14, 2048  ;;  %p23_p1 = scmp.lt.s32.totalorder %s6_s14, %s6_s14 }
   0x4   :  { %p19_p0 = scmp.ne.s32.totalorder %s6_s14, %s18_s15  ;;  %p24_p2 = scmp.lt.s32.totalorder %s18_s15, %s18_s15 }
   0x6   :  { %p25_p3 = por %p24_p2, %p23_p1 }
   0x8   :  { %p26_p4 = pnand %p25_p3, %p19_p0 }
   0xa   :  { %29 = shalt.err (!%p26_p4)  }
   0xb   :  { %8 = dma.vmem_to_hbm [thread:$0]  %s6_s14, 2048, %s94_s2, [#allocation0] }
   0xc   :  { %61 = dma.done.wait [#allocation0], 2048  }
   0xd   :  { %62 = vsyncadd [#allocation0], 4294965248 }
   0xe   :  { %10 = vsyncpa [#allocation0], 1 }
   0xf   :  { %11 = vsyncpa [#allocation1], 0  ;;  %s12_s0 = sshll.u32 %s93_s1, 4  ;;  %s13_s0 = int_to_ptr.vmem [resolvable:$true] %s12_s0 }
  0x10   :  { %s38_s20 = scalar_lea.vmem %s13_s0, 2048  ;;  %p43_p6 = scmp.lt.s32.totalorder %s13_s0, %s13_s0 }
  0x11   :  { %p39_p5 = scmp.ne.s32.totalorder %s13_s0, %s38_s20  ;;  %p44_p7 = scmp.lt.s32.totalorder %s38_s20, %s38_s20 }
  0x13   :  { %p45_p8 = por %p44_p7, %p43_p6 }
  0x15   :  { %p46_p9 = pnand %p45_p8, %p39_p5 }
  0x17   :  { %49 = shalt.err (!%p46_p9)  }
  0x18   :  { %15 = dma.vmem_to_hbm [thread:$0]  %s13_s0, 2048, %s3_s11, [#allocation1] }
  0x19   :  { %63 = dma.done.wait [#allocation1], 2048  }
  0x1a   :  { %64 = vsyncadd [#allocation1], 4294965248 }
  0x1b   :  { %17 = vsyncpa [#allocation1], 1 }

// kernel: opt_aeg_v3_forward.1
= control target key start
LH: loop header
LB: loop body
LE: loop exit
PB: predicated region body
PF: predicated region fallthrough
CT: control target
= control target key end

     0   :  { %10 = vsyncpa [#allocation3], 0  ;;  %s3654_s0 = inlined_call_operand.vmem [shape: f32[12], index: 0, kind: input, shape index: {}]   ;;  %s3655_s1 = inlined_call_operand.vmem [shape: f32[8,512], index: 1, kind: input, shape index: {}]   ;;  %s3656_s2 = inlined_call_operand.vmem [shape: f32[8,512], index: 2, kind: input, shape index: {}]   ;;  %s3657_s3 = inlined_call_operand.vmem [shape: f32[8,512], index: 3, kind: output, shape index: {0}]   ;;  %s3658_s4 = inlined_call_operand.vmem [shape: f32[8,512], index: 4, kind: output, shape index: {1}]  }
   0x1   :  { %s17_s17 = sshll.u32 %s3654_s0, 4  ;;  %s18_s17 = int_to_ptr.vmem [resolvable:$true] %s17_s17 }
   0x2   :  { %s2324_s18 = scalar_lea.vmem %s18_s17, 16  ;;  %p2329_p1 = scmp.lt.s32.totalorder %s18_s17, %s18_s17 }
   0x3   :  { %p2325_p0 = scmp.ne.s32.totalorder %s18_s17, %s2324_s18  ;;  %p2330_p2 = scmp.lt.s32.totalorder %s2324_s18, %s2324_s18 }
   0x5   :  { %p2331_p3 = por %p2330_p2, %p2329_p1 }
   0x7   :  { %p2332_p4 = pnand %p2331_p3, %p2325_p0 }
   0x9   :  { %2335 = shalt.err (!%p2332_p4)
}
   0xa   :  { %s2338_s19 = smov [#allocation2]  }
   0xb   :  { %20 = dma.vmem_to_smem %s18_s17, 16, %s2338_s19, [#allocation3]  }
   0xc   :  { %2336 = dma.done.wait [#allocation3], 16  }
   0xd   :  { %2337 = vsyncadd [#allocation3], 4294967280 }
   0xe   :  { %28 = sfence }
   0xf   :  { %v41_v0 = vld [vmem:[%s3655_s1] sm:$0xff]  ;;  %v42_v1 = vld [vmem:[%s3655_s1 + $0x8] sm:$0xff]  ;;  %v43_v2 = vld [vmem:[%s3655_s1 + $0x10] sm:$0xff]  ;;  %s2118_s9 = sld [smem:[#allocation2 + $0x5]] }
  0x10   :  { %v44_v3 = vld [vmem:[%s3655_s1 + $0x18] sm:$0xff]  ;;  %v45_v4 = vld [vmem:[%s3656_s2] sm:$0xff]  ;;  %v46_v5 = vld [vmem:[%s3656_s2 + $0x8] sm:$0xff]  ;;  %v49_v7 = vadd.f32 1e-08, %v41_v0  ;;  %s2119_s1 = sld [smem:[#allocation2 + $0x6]] }
  0x11   :  { %v47_v6 = vld [vmem:[%s3656_s2 + $0x10] sm:$0xff]  ;;  %v48_v8 = vld [vmem:[%s3656_s2 + $0x18] sm:$0xff]  ;;  %v50_v9 = vadd.f32 1e-08, %v42_v1  ;;  %v51_v10 = vadd.f32 1e-08, %v43_v2 }
  0x12   :  { %v52_v11 = vadd.f32 1e-08, %v44_v3  ;;  %v53_v12 = vadd.f32 1e-08, %v45_v4  ;;  %v57_v13 = vmul.f32 %v49_v7, %v49_v7  ;;  %v54_v14 = vadd.f32 1e-08, %v46_v5 }
  0x13   :  { %v55_v15 = vadd.f32 1e-08, %v47_v6  ;;  %v58_v16 = vmul.f32 %v50_v9, %v50_v9  ;;  %v59_v17 = vmul.f32 %v51_v10, %v51_v10  ;;  %v56_v18 = vadd.f32 1e-08, %v48_v8  ;;  %s2120_s2 = sld [smem:[#allocation2 + $0x7]] }
  0x14   :  { %v60_v19 = vmul.f32 %v52_v11, %v52_v11  ;;  %v61_v20 = vmul.f32 %v53_v12, %v53_v12  ;;  %v62_v21 = vmul.f32 %v54_v14, %v54_v14  ;;  %s2117_s10 = sld [smem:[#allocation2 + $0x4]] }
  0x15   :  { %v63_v22 = vmul.f32 %v55_v15, %v55_v15  ;;  %v64_v23 = vmul.f32 %v56_v18, %v56_v18  ;;  %v2451_v8 = vstv %s2118_s9  ;;  %s2115_s11 = sld [smem:[#allocation2 + $0x2]] }
  0x16   :  { %v65_v24 = vadd.f32 %v61_v20, %v57_v13  ;;  %v66_v25 = vadd.f32 %v62_v21, %v58_v16  ;;  %v129_v48 = vstv %s2119_s1  ;;  %s2116_s12 = sld [smem:[#allocation2 + $0x3]] }
  0x17   :  { %v67_v26 = vadd.f32 %v63_v22, %v59_v17  ;;  %v68_v27 = vadd.f32 %v64_v23, %v60_v19  ;;  %s2747_s13 = sld [smem:[#allocation2]] }
  0x18   :  { %2228 = vrsqrt.f32 %v65_v24  ;;  %s2114_s14 = sld [smem:[#allocation2 + $0x1]] }
  0x19   :  { %2230 = vrsqrt.f32 %v66_v25  ;;  %v134_v49 = vstv %s2120_s2  ;;  %s2818_s15 = sld [smem:[#allocation2 + $0x8]] }
  0x1a   :  { %2232 = vrsqrt.f32 %v67_v26  ;;  %s2820_s16 = sld [smem:[#allocation2 + $0x9]] }
  0x1b   :  { %2234 = vrsqrt.f32 %v68_v27  ;;  %s3434_s17 = sld [smem:[#allocation2 + $0xa]] }
  0x1c   :  { %s3443_s18 = sld [smem:[#allocation2 + $0xb]] }
  0x25   :  { %v2229_v28 = vpop.eup %2228 }
  0x26   :  { %v2231_v29 = vpop.eup %2230  ;;  %v73_v30 = vmul.f32 %v2229_v28, %v65_v24 }
  0x27   :  { %v2233_v31 = vpop.eup %2232  ;;  %v74_v32 = vmul.f32 %v2231_v29, %v66_v25 }
  0x28   :  { %v2235_v33 = vpop.eup %2234  ;;  %v75_v34 = vmul.f32 %v2233_v31, %v67_v26  ;;  %2236 = vtanh.f32 %v73_v30 }
  0x29   :  { %v76_v35 = vmul.f32 %v2235_v33, %v68_v27  ;;  %2238 = vtanh.f32 %v74_v32 }
  0x2a   :  { %2240 = vtanh.f32 %v75_v34 }
  0x2b   :  { %2242 = vtanh.f32 %v76_v35 }
  0x35   :  { %v2237_v36 = vpop.eup %2236 }
  0x36   :  { %v2239_v37 = vpop.eup %2238  ;;  %v81_v40 = vmul.f32 %v2237_v36, %v2229_v28 }
  0x37   :  { %v2241_v38 = vpop.eup %2240  ;;  %v82_v41 = vmul.f32 %v2239_v37, %v2231_v29 }
  0x38   :  { %v2243_v39 = vpop.eup %2242  ;;  %v83_v42 = vmul.f32 %v2241_v38, %v2233_v31  ;;  %v2397_v44 = vmul.f32 %v81_v40, %v49_v7  ;;  %v2405_v50 = vmul.f32 %v81_v40, %v53_v12 }
  0x39   :  { %v84_v43 = vmul.f32 %v2243_v39, %v2235_v33  ;;  %v2399_v45 = vmul.f32 %v82_v41, %v50_v9  ;;  %v2407_v51 = vmul.f32 %v82_v41, %v54_v14 }
  0x3a   :  { %v2401_v46 = vmul.f32 %v83_v42, %v51_v10  ;;  %v2410_v52 = vmul.f32 %v129_v48, %v2397_v44  ;;  %v2415_v54 = vmul.f32 %v83_v42, %v55_v15  ;;  %v2426_v58 = vmul.f32 %v134_v49, %v2405_v50 }
  0x3b   :  { %v2403_v47 = vmul.f32 %v84_v43, %v52_v11  ;;  %v2413_v53 = vmul.f32 %v129_v48, %v2399_v45  ;;  %v2417_v55 = vmul.f32 %v84_v43, %v56_v18  ;;  %v2429_v59 = vmul.f32 %v134_v49, %v2407_v51 }
  0x3c   :  { %3696 = vst [vmem:[#allocation5_spill] sm:$0xff] %v2401_v46  ;;  %v2420_v56 = vmul.f32 %v129_v48, %v2401_v46  ;;  %v2432_v60 = vmul.f32 %v134_v49, %v2415_v54  ;;  %v139_v62 = vsub.f32 %v2410_v52, %v2426_v58  ;;  %v148_v0 = vmul.f32 %v134_v49, %v2397_v44 }
  0x3d   :  { %3697 = vst [vmem:[#allocation6_spill] sm:$0xff] %v2403_v47  ;;  %v2423_v57 = vmul.f32 %v129_v48, %v2403_v47  ;;  %v2435_v61 = vmul.f32 %v134_v49, %v2417_v55  ;;  %v149_v1 = vmul.f32 %v134_v49, %v2399_v45  ;;  %v150_v4 = vmul.f32 %v134_v49, %v2401_v46 }
  0x3e   :  { %v152_v5 = vmul.f32 %v129_v48, %v2405_v50  ;;  %v153_v6 = vmul.f32 %v129_v48, %v2407_v51  ;;  %v154_v7 = vmul.f32 %v129_v48, %v2415_v54  ;;  %v151_v25 = vmul.f32 %v134_v49, %v2403_v47 }
  0x3f   :  { %v155_v26 = vmul.f32 %v129_v48, %v2417_v55  ;;  %v3671_v49 = vmov 683565275  }
  0x40   :  { %v156_v9 = vadd.f32 %v152_v5, %v148_v0  ;;  %v157_v10 = vadd.f32 %v153_v6, %v149_v1  ;;  %v158_v11 = vadd.f32 %v154_v7, %v150_v4  ;;  %v3669_v1 = vmov 2475754826  }
  0x41   :  { %v2473_v34 = vadd.f32 %v155_v26, %v151_v25  ;;  %v3667_v5 = vmov 2131351028   ;;  %v3665_v7 = vmov 2102212464  }
  0x42   :  { %v2454_v12 = vadd.f32 %v2451_v8, %v156_v9  ;;  %v2457_v13 = vadd.f32 %v2451_v8, %v157_v10  ;;  %v2460_v14 = vadd.f32 %v2451_v8, %v158_v11  ;;  %v3662_v10 = vmov 920167782  }
  0x44   :  { %v169_v15 = vand.u32 2147483647, %v2454_v12  ;;  %v172_v16 = vand.u32 2139095040, %v2454_v12  ;;  %v273_v17 = vand.u32 2147483647, %v2457_v13  ;;  %v276_v18 = vand.u32 2139095040, %v2457_v13 }
  0x45   :  { %v380_v23 = vand.u32 2139095040, %v2460_v14  ;;  %v3659_v39 = vand.u32 2147483647, %v2460_v14 }
  0x46   :  { %v173_v19 = vshrl.u32 %v172_v16, 23  ;;  %v176_v20 = vand.u32 8388607, %v169_v15  ;;  %v277_v21 = vshrl.u32 %v276_v18, 23  ;;  %v280_v22 = vand.u32 8388607, %v273_v17 }
  0x47   :  { %v381_v28 = vshrl.u32 %v380_v23, 23  ;;  %v3660_v23 = vmov 1326507024  }
  0x48   :  { %v2125_v24 = vadd.s32 4294967169, %v173_v19  ;;  %v2129_v27 = vadd.s32 4294967169, %v277_v21  ;;  %v177_v30 = vor.u32 8388608, %v176_v20  ;;  %v281_v31 = vor.u32 8388608, %v280_v22 }
  0x49   :  { %v2133_v33 = vadd.s32 4294967169, %v381_v28 }
  0x4a   :  { %v179_v29 = vadd.s32 1, %v2125_v24  ;;  %v283_v32 = vadd.s32 1, %v2129_v27  ;;  %v2476_v40 = vshll.u32 %v177_v30, 8  ;;  %v2478_v42 = vshll.u32 %v281_v31, 8 }
  0x4b   :  { %v2480_v43 = vadd.s32 1, %v2133_v33 }
  0x4c   :  { %vm180_vm0 = vcmp.gt.s32.totalorder %v179_v29, 0  ;;  %vm284_vm1 = vcmp.gt.s32.totalorder %v283_v32, 0 }
  0x4d   :  { %v181_v35 = vsel %vm180_vm0, %v179_v29, 0  ;;  %v285_v38 = vsel %vm284_vm1, %v283_v32, 0  ;;  %vm388_vm6 = vcmp.gt.s32.totalorder %v2480_v43, 0 }
  0x4e   :  { %v182_v36 = vshrl.u32 %v181_v35, 5  ;;  %v183_v37 = vand.u32 31, %v181_v35  ;;  %v287_v41 = vand.u32 31, %v285_v38  ;;  %v2487_v16 = vshrl.u32 %v285_v38, 5 }
  0x50   :  { %v184_v48 = vsub.s32 32, %v183_v37  ;;  %v186_v0 = vshll.u32 %v3671_v49, %v183_v37  ;;  %v189_v4 = vshll.u32 %v3669_v1, %v183_v37  ;;  %v192_v6 = vshll.u32 %v3667_v5, %v183_v37 }
  0x51   :  { %v195_v9 = vshll.u32 %v3665_v7, %v183_v37  ;;  %v198_v11 = vshll.u32 %v3662_v10, %v183_v37  ;;  %vm201_vm2 = vcmp.lt.s32.totalorder %v182_v36, 1  ;;  %vm202_vm3 = vcmp.lt.s32.totalorder %v182_v36, 2 }
  0x52   :  { %v185_v18 = vshrl.u32 %v3671_v49, %v184_v48  ;;  %v187_v19 = vshrl.u32 %v3669_v1, %v184_v48  ;;  %v190_v20 = vshrl.u32 %v3667_v5, %v184_v48  ;;  %v193_v21 = vshrl.u32 %v3665_v7, %v184_v48 }
  0x53   :  { %v196_v22 = vshrl.u32 %v3662_v10, %v184_v48  ;;  %v199_v24 = vshrl.u32 %v3660_v23, %v184_v48  ;;  %vm204_vm4 = vcmp.lt.s32.totalorder %v182_v36, 4  ;;  %v288_v28 = vsub.s32 32, %v287_v41 }
  0x54   :  { %v188_v25 = vor.u32 %v187_v19, %v186_v0  ;;  %v191_v26 = vor.u32 %v190_v20, %v189_v4  ;;  %v194_v27 = vor.u32 %v193_v21, %v192_v6  ;;  %vm203_vm5 = vcmp.lt.s32.totalorder %v182_v36, 3 }
  0x55   :  { %v197_v29 = vor.u32 %v196_v22, %v195_v9  ;;  %v200_v30 = vor.u32 %v199_v24, %v198_v11  ;;  %v290_v31 = vshll.u32 %v3671_v49, %v287_v41  ;;  %v293_v0 = vshll.u32 %v3669_v1, %v287_v41 }
  0x56   :  { %v205_v32 = vsel %vm201_vm2, %v185_v18, %v188_v25  ;;  %v206_v33 = vsel %vm204_vm4, %v194_v27, 2102212464  ;;  %v209_v35 = vsel %vm201_vm2, %v188_v25, %v191_v26  ;;  %v213_v37 = vsel %vm201_vm2, %v191_v26, %v194_v27 }
  0x57   :  { %v207_v38 = vsel %vm203_vm5, %v191_v26, %v206_v33  ;;  %v210_v48 = vsel %vm204_vm4, %v197_v29, 920167782  ;;  %v214_v3 = vsel %vm204_vm4, %v200_v30, 1326507024  ;;  %v289_v9 = vshrl.u32 %v3671_v49, %v288_v28 }
  0x58   :  { %v211_v4 = vsel %vm203_vm5, %v194_v27, %v210_v48  ;;  %v215_v6 = vsel %vm203_vm5, %v197_v29, %v214_v3  ;;  %v291_v11 = vshrl.u32 %v3669_v1, %v288_v28  ;;  %v208_v18 = vsel %vm202_vm3, %v205_v32, %v207_v38 }
  0x59   :  { %v212_v19 = vsel %vm202_vm3, %v209_v35, %v211_v4  ;;  %v216_v20 = vsel %vm202_vm3, %v213_v37, %v215_v6  ;;  %v294_v21 = vshrl.u32 %v3667_v5, %v288_v28  ;;  %v296_v29 = vshll.u32 %v3667_v5, %v287_v41 }
  0x5a   :  { %v2508_v22 = vmul.u32.u64.low %v2476_v40, %v216_v20  ;;  %v2509_v24 = vmul.u32.u64.high %v2476_v40, %v216_v20, %v2508_v22  ;;  %v2512_v25 = vmul.u32.u64.low %v2476_v40, %v212_v19  ;;  %v2513_v26 = vmul.u32.u64.high %v2476_v40, %v212_v19, %v2512_v25 }
  0x5b   :  { %v292_v3 = vor.u32 %v291_v11, %v290_v31  ;;  %v295_v27 = vor.u32 %v294_v21, %v293_v0  ;;  %v297_v30 = vshrl.u32 %v3665_v7, %v288_v28  ;;  %v299_v36 = vshll.u32 %v3665_v7, %v287_v41 }
  0x5c   :  { %v300_v32 = vshrl.u32 %v3662_v10, %v288_v28  ;;  %v302_v33 = vshll.u32 %v3662_v10, %v287_v41  ;;  %v303_v35 = vshrl.u32 %v3660_v23, %v288_v28  ;;  %v224_v37 = vmul.u32 %v2476_v40, %v208_v18 }
  0x5d   :  { %v298_v38 = vor.u32 %v297_v30, %v296_v29  ;;  %vm305_vm7 = vcmp.lt.s32.totalorder %v2487_v16, 1  ;;  %vm306_vm8 = vcmp.lt.s32.totalorder %v2487_v16, 2  ;;  %vm226_vm9 = vc.u32 %v2509_v24, %v2512_v25 }
  0x5e   :  { %v227_v31 = vadd.s32 1, %v2513_v26  ;;  %v301_v48 = vor.u32 %v300_v32, %v299_v36  ;;  %vm307_vm10 = vcmp.lt.s32.totalorder %v2487_v16, 3  ;;  %v304_v0 = vor.u32 %v303_v35, %v302_v33 }
  0x5f   :  { %vm308_vm11 = vcmp.lt.s32.totalorder %v2487_v16, 4  ;;  %v309_v41 = vsel %vm305_vm7, %v289_v9, %v292_v3  ;;  %v313_v28 = vsel %vm305_vm7, %v292_v3, %v295_v27  ;;  %v317_v11 = vsel %vm305_vm7, %v295_v27, %v298_v38 }
  0x60   :  { %v228_v40 = vsel %vm226_vm9, %v227_v31, %v2513_v26  ;;  %v310_v4 = vsel %vm308_vm11, %v298_v38, 2102212464  ;;  %v314_v6 = vsel %vm308_vm11, %v301_v48, 920167782  ;;  %v318_v21 = vsel %vm308_vm11, %v304_v0, 1326507024 }
  0x61   :  { %v229_v18 = vadd.s32 %v228_v40, %v224_v37  ;;  %v311_v19 = vsel %vm307_vm10, %v295_v27, %v310_v4  ;;  %v315_v20 = vsel %vm307_vm10, %v298_v38, %v314_v6  ;;  %v319_v30 = vsel %vm307_vm10, %v301_v48, %v318_v21 }
  0x62   :  { %v312_v22 = vsel %vm306_vm8, %v309_v41, %v311_v19  ;;  %v316_v29 = vsel %vm306_vm8, %v313_v28, %v315_v20  ;;  %v389_v9 = vsel %vm388_vm6, %v2480_v43, 0  ;;  %v320_v26 = vsel %vm306_vm8, %v317_v11, %v319_v30 }
  0x63   :  { %v230_v3 = vadd.s32 536870912, %v229_v18  ;;  %v2541_v36 = vmul.u32.u64.low %v2478_v42, %v316_v29  ;;  %v2542_v27 = vmul.u32.u64.high %v2478_v42, %v316_v29, %v2541_v36  ;;  %v384_v35 = vand.u32 8388607, %v3659_v39 }
  0x64   :  { %v2546_v32 = vmul.u32.u64.low %v2478_v42, %v320_v26  ;;  %v2547_v33 = vmul.u32.u64.high %v2478_v42, %v320_v26, %v2546_v32  ;;  %v2553_v43 = vadd.f32 %v2451_v8, %v2473_v34  ;;  %v391_v16 = vand.u32 31, %v389_v9 }
  0x65   :  { %v2555_v37 = vshrl.u32 %v230_v3, 30  ;;  %v328_v38 = vmul.u32 %v2478_v42, %v312_v22  ;;  %v331_v48 = vadd.s32 1, %v2542_v27  ;;  %v385_v41 = vor.u32 8388608, %v384_v35 }
  0x66   :  { %v392_v0 = vsub.s32 32, %v391_v16  ;;  %vm330_vm12 = vc.u32 %v2547_v33, %v2541_v36  ;;  %v2565_v8 = vshrl.u32 %v389_v9, 5  ;;  %v484_v34 = vand.u32 2139095040, %v2553_v43 }
  0x67   :  { %v232_v31 = vshll.u32 %v2555_v37, 30  ;;  %v332_v40 = vsel %vm330_vm12, %v331_v48, %v2542_v27  ;;  %v394_v42 = vshll.u32 %v3671_v49, %v391_v16  ;;  %v397_v11 = vshll.u32 %v3669_v1, %v391_v16 }
  0x68   :  { %v333_v4 = vadd.s32 %v332_v40, %v328_v38  ;;  %v395_v6 = vshrl.u32 %v3669_v1, %v392_v0  ;;  %v398_v20 = vshrl.u32 %v3667_v5, %v392_v0  ;;  %v401_v21 = vshrl.u32 %v3665_v7, %v392_v0 }
  0x69   :  { %v2562_v28 = vsub.s32 %v229_v18, %v232_v31  ;;  %v400_v18 = vshll.u32 %v3667_v5, %v391_v16  ;;  %v2575_v22 = vstv %s2117_s10  ;;  %v403_v30 = vshll.u32 %v3665_v7, %v391_v16 }
  0x6a   :  { %v334_v29 = vadd.s32 536870912, %v333_v4  ;;  %v2578_v9 = vshll.u32 %v385_v41, 8  ;;  %v404_v26 = vshrl.u32 %v3662_v10, %v392_v0  ;;  %vm412_vm13 = vcmp.lt.s32.totalorder %v2565_v8, 4 }
  0x6b   :  { %v235_v19 = vsub.s32 0, %v2562_v28  ;;  %v485_v27 = vshrl.u32 %v484_v34, 23  ;;  %v393_v35 = vshrl.u32 %v3671_v49, %v392_v0  ;;  %v406_v38 = vshll.u32 %v3662_v10, %v391_v16 }
  0x6c   :  { %v2583_v32 = vshrl.u32 %v334_v29, 30  ;;  %v407_v31 = vshrl.u32 %v3660_v23, %v392_v0  ;;  %v396_v40 = vor.u32 %v395_v6, %v394_v42  ;;  %v399_v39 = vor.u32 %v398_v20, %v397_v11 }
  0x6d   :  { %v2126_v3 = vmin.u32 %v235_v19, %v2562_v28  ;;  %v402_v41 = vor.u32 %v401_v21, %v400_v18  ;;  %v405_v19 = vor.u32 %v404_v26, %v403_v30  ;;  %vm409_vm14 = vcmp.lt.s32.totalorder %v2565_v8, 1 }
  0x6e   :  { %v336_v2 = vshll.u32 %v2583_v32, 30  ;;  %vm411_vm15 = vcmp.lt.s32.totalorder %v2565_v8, 3  ;;  %v225_v34 = vadd.s32 %v2512_v25, %v2509_v24  ;;  %v408_v63 = vor.u32 %v407_v31, %v406_v38 }
  0x6f   :  { %v237_v48 = vclz %v2126_v3  ;;  %v414_v16 = vsel %vm412_vm13, %v402_v41, 2102212464  ;;  %vm410_vm0 = vcmp.lt.s32.totalorder %v2565_v8, 2  ;;  %v418_v42 = vsel %vm412_vm13, %v405_v19, 920167782 }
  0x70   :  { %v2595_v0 = vsub.s32 %v333_v4, %v336_v2  ;;  %v2137_v6 = vadd.s32 4294967169, %v485_v27  ;;  %v413_v11 = vsel %vm409_vm14, %v393_v35, %v396_v40  ;;  %v417_v24 = vsel %vm409_vm14, %v396_v40, %v399_v39 }
  0x71   :  { %v2127_v29 = vadd.s32 4294967294, %v237_v48  ;;  %v419_v25 = vsel %vm411_vm15, %v402_v41, %v418_v42  ;;  %v415_v4 = vsel %vm411_vm15, %v399_v39, %v414_v16  ;;  %v421_v18 = vsel %vm409_vm14, %v399_v39, %v402_v41 }
  0x72   :  { %v339_v2 = vsub.s32 0, %v2595_v0  ;;  %v422_v26 = vsel %vm412_vm13, %v408_v63, 1326507024  ;;  %v420_v35 = vsel %vm410_vm0, %v417_v24, %v419_v25  ;;  %v481_v31 = vand.u32 2147483647, %v2553_v43 }
  0x73   :  { %vm2128_vm1 = vcmp.lt.s32.totalorder %v2127_v29, 0  ;;  %v423_v38 = vsel %vm411_vm15, %v405_v19, %v422_v26  ;;  %vm171_vm2 = vcmp.lt.s32.totalorder %v2454_v12, 0  ;;  %v255_v63 = vsub.s32 4, %v2555_v37 }
  0x74   :  { %v240_v20 = vsel %vm2128_vm1, 0, %v2127_v29  ;;  %v2130_v27 = vmin.u32 %v339_v2, %v2595_v0  ;;  %v424_v39 = vsel %vm410_vm0, %v421_v18, %v423_v38  ;;  %v416_v29 = vsel %vm410_vm0, %v413_v11, %v415_v4 }
  0x75   :  { %v241_v21 = vsub.s32 32, %v240_v20  ;;  %v242_v30 = vshll.u32 %v2562_v28, %v240_v20  ;;  %v245_v3 = vsub.s32 4294967266, %v240_v20  ;;  %v491_v28 = vadd.s32 1, %v2137_v6 }
  0x76   :  { %v341_v41 = vclz %v2130_v27  ;;  %v2627_v19 = vmul.u32.u64.low %v2578_v9, %v424_v39  ;;  %v2628_v24 = vmul.u32.u64.high %v2578_v9, %v424_v39, %v2627_v19  ;;  %v488_v18 = vand.u32 8388607, %v481_v31 }
  0x77   :  { %v243_v48 = vshrl.u32 %v225_v34, %v241_v21  ;;  %v246_v40 = vadd.s32 127, %v245_v3  ;;  %v2631_v25 = vmul.u32.u64.low %v2578_v9, %v420_v35  ;;  %v2632_v20 = vmul.u32.u64.high %v2578_v9, %v420_v35, %v2631_v25 }
  0x78   :  { %v2131_v34 = vadd.s32 4294967294, %v341_v41  ;;  %vm492_vm3 = vcmp.gt.s32.totalorder %v491_v28, 0  ;;  %v256_v11 = vsel %vm171_vm2, %v255_v63, %v2555_v37  ;;  %v432_v3 = vmul.u32 %v2578_v9, %v416_v29 }
  0x79   :  { %v244_v16 = vor.u32 %v243_v48, %v242_v30  ;;  %v247_v42 = vshll.u32 %v246_v40, 23  ;;  %v493_v8 = vsel %vm492_vm3, %v491_v28, 0  ;;  %vm434_vm5 = vc.u32 %v2628_v24, %v2631_v25 }
  0x7a   :  { %vm2132_vm4 = vcmp.lt.s32.totalorder %v2131_v34, 0  ;;  %v495_v4 = vand.u32 31, %v493_v8  ;;  %v144_v26 = vadd.f32 %v2575_v22, %v139_v62  ;;  %vm2649_vm6 = vcmp.le.f32.partialorder %v169_v15, 0.7853982 }
  0x7b   :  { %v248_v6 = vor.u32 4788187, %v247_v42  ;;  %v251_v2 = vcvt.s32.f32 %v244_v16  ;;  %v344_v30 = vsel %vm2132_vm4, 0, %v2131_v34  ;;  %v435_v37 = vadd.s32 1, %v2632_v20 }
  0x7c   :  { %v349_v38 = vsub.s32 4294967266, %v344_v30  ;;  %v489_v48 = vor.u32 8388608, %v488_v18  ;;  %v496_v9 = vsub.s32 32, %v495_v4  ;;  %v258_v40 = vsel %vm2649_vm6, 0, %v256_v11 }
  0x7d   :  { %v249_v21 = vand.u32 2147483647, %v248_v6  ;;  %v329_v52 = vadd.s32 %v2541_v36, %v2547_v33  ;;  %v345_v58 = vsub.s32 32, %v344_v30  ;;  %v436_v62 = vsel %vm434_vm5, %v435_v37, %v2632_v20 }
  0x7e   :  { %v437_v15 = vadd.s32 %v436_v62, %v432_v3  ;;  %v498_v28 = vshll.u32 %v3671_v49, %v495_v4  ;;  %v499_v63 = vshrl.u32 %v3669_v1, %v496_v9  ;;  %v346_v41 = vshll.u32 %v2595_v0, %v344_v30 }
  0x7f   :  { %v252_v35 = vmul.f32 %v251_v2, %v249_v21  ;;  %v2662_v29 = vshrl.u32 %v493_v8, 5  ;;  %v501_v16 = vshll.u32 %v3669_v1, %v495_v4  ;;  %v502_v42 = vshrl.u32 %v3667_v5, %v496_v9 }
  0x80   :  { %v350_v33 = vadd.s32 127, %v349_v38  ;;  %v438_v19 = vadd.s32 536870912, %v437_v15  ;;  %v507_v34 = vshll.u32 %v3665_v7, %v495_v4  ;;  %v347_v6 = vshrl.u32 %v329_v52, %v345_v58 }
  0x81   :  { %v253_v39 = vxor.u32 2147483648, %v252_v35  ;;  %v504_v0 = vshll.u32 %v3667_v5, %v495_v4  ;;  %v505_v2 = vshrl.u32 %v3665_v7, %v496_v9  ;;  %v500_v8 = vor.u32 %v499_v63, %v498_v28 }
  0x82   :  { %v2674_v18 = vshrl.u32 %v438_v19, 30  ;;  %v508_v11 = vshrl.u32 %v3662_v10, %v496_v9  ;;  %v503_v21 = vor.u32 %v502_v42, %v501_v16  ;;  %v510_v30 = vshll.u32 %v3662_v10, %v495_v4 }
  0x83   :  { %v254_v36 = vsel %vm171_vm2, %v253_v39, %v252_v35  ;;  %v511_v3 = vshrl.u32 %v3660_v23, %v496_v9  ;;  %v351_v37 = vshll.u32 %v350_v33, 23  ;;  %vm513_vm7 = vcmp.lt.s32.totalorder %v2662_v29, 1 }
  0x84   :  { %v257_v20 = vsel %vm2649_vm6, %v2454_v12, %v254_v36  ;;  %v440_v27 = vshll.u32 %v2674_v18, 30  ;;  %v509_v35 = vor.u32 %v508_v11, %v507_v34  ;;  %v262_v38 = vadd.s32 3, %v258_v40 }
  0x85   :  { %2244 = vcosq.f32 %v257_v20  ;;  %v506_v52 = vor.u32 %v505_v2, %v504_v0  ;;  %vm515_vm8 = vcmp.lt.s32.totalorder %v2662_v29, 3  ;;  %vm516_vm9 = vcmp.lt.s32.totalorder %v2662_v29, 4 }
  0x86   :  { %2246 = vsinq.f32 %v257_v20  ;;  %v2681_v58 = vsub.s32 %v437_v15, %v440_v27  ;;  %v512_v62 = vor.u32 %v511_v3, %v510_v30  ;;  %vm514_vm10 = vcmp.lt.s32.totalorder %v2662_v29, 2 }
  0x87   :  { %2248 = vtanh.f32 %v144_v26  ;;  %v521_v4 = vsel %vm513_vm7, %v500_v8, %v503_v21  ;;  %v529_v39 = vshll.u32 %v489_v48, 8  ;;  %v348_v28 = vor.u32 %v347_v6, %v346_v41 }
  0x88   :  { %v352_v63 = vor.u32 4788187, %v351_v37  ;;  %v443_v16 = vsub.s32 0, %v2681_v58  ;;  %v522_v26 = vsel %vm516_vm9, %v509_v35, 920167782  ;;  %v263_v15 = vand.u32 3, %v262_v38 }
  0x89   :  { %v523_v42 = vsel %vm515_vm8, %v506_v52, %v522_v26  ;;  %v497_v33 = vshrl.u32 %v3671_v49, %v496_v9  ;;  %v518_v19 = vsel %vm516_vm9, %v506_v52, 2102212464  ;;  %v525_v41 = vsel %vm513_vm7, %v503_v21, %v506_v52 }
  0x8a   :  { %v2134_v36 = vmin.u32 %v443_v16, %v2681_v58  ;;  %v524_v48 = vsel %vm514_vm10, %v521_v4, %v523_v42  ;;  %v526_v34 = vsel %vm516_vm9, %v512_v62, 1326507024  ;;  %v353_v0 = vand.u32 2147483647, %v352_v63 }
  0x8b   :  { %v2703_v20 = vmul.u32.u64.low %v529_v39, %v524_v48  ;;  %v2704_v6 = vmul.u32.u64.high %v529_v39, %v524_v48, %v2703_v20  ;;  %v355_v2 = vcvt.s32.f32 %v348_v28  ;;  %v527_v9 = vsel %vm515_vm8, %v509_v35, %v526_v34 }
  0x8c   :  { %v678_v11 = vand.u32 3, %v258_v40  ;;  %v445_v30 = vclz %v2134_v36  ;;  %v517_v3 = vsel %vm513_vm7, %v497_v33, %v500_v8  ;;  %v519_v37 = vsel %vm515_vm8, %v503_v21, %v518_v19 }
  0x8d   :  { %v528_v27 = vsel %vm514_vm10, %v525_v41, %v527_v9  ;;  %vm268_vm11 = vcmp.eq.s32.totalorder %v263_v15, 2  ;;  %vm265_vm12 = vcmp.eq.s32.totalorder %v263_v15, 0  ;;  %v356_v35 = vmul.f32 %v355_v2, %v353_v0 }
  0x8e   :  { %v2715_v52 = vmul.u32.u64.low %v529_v39, %v528_v27  ;;  %v2716_v62 = vmul.u32.u64.high %v529_v39, %v528_v27, %v2715_v52  ;;  %vm680_vm13 = vcmp.eq.s32.totalorder %v678_v11, 0  ;;  %vm261_vm14 = vweird.f32 %v2454_v12 }
  0x8f   :  { %vm264_vm15 = vcmp.lt.s32.totalorder %v263_v15, 2  ;;  %v520_v8 = vsel %vm514_vm10, %v517_v3, %v519_v37  ;;  %v2135_v63 = vadd.s32 4294967294, %v445_v30  ;;  %v539_v16 = vadd.s32 1, %v2704_v6 }
  0x90   :  { %vm683_vm0 = vcmp.eq.s32.totalorder %v678_v11, 2  ;;  %vm538_vm1 = vc.u32 %v2716_v62, %v2703_v20  ;;  %vm679_vm2 = vcmp.lt.s32.totalorder %v678_v11, 2  ;;  %v357_v19 = vxor.u32 2147483648, %v356_v35 }
  0x91   :  { %vm275_vm3 = vcmp.lt.s32.totalorder %v2457_v13, 0  ;;  %v536_v29 = vmul.u32 %v529_v39, %v520_v8  ;;  %vm2136_vm4 = vcmp.lt.s32.totalorder %v2135_v63, 0  ;;  %v540_v41 = vsel %vm538_vm1, %v539_v16, %v2704_v6 }
  0x92   :  { %v2245_v38 = vpop.eup %2244  ;;  %vm2734_vm5 = vcmp.le.f32.partialorder %v273_v17, 0.7853982  ;;  %v358_v9 = vsel %vm275_vm3, %v357_v19, %v356_v35  ;;  %v448_v30 = vsel %vm2136_vm4, 0, %v2135_v63  ;;  %v359_v27 = vsub.s32 4, %v2583_v32 }
  0x93   :  { %v2247_v4 = vpop.eup %2246  ;;  %v269_v28 = vxor.u32 2147483648, %v2245_v38  ;;  %v541_v3 = vadd.s32 %v540_v41, %v536_v29  ;;  %v361_v12 = vsel %vm2734_vm5, %v2457_v13, %v358_v9  ;;  %v453_v37 = vsub.s32 4294967266, %v448_v30 }
  0x94   :  { %v266_v40 = vxor.u32 2147483648, %v2247_v4  ;;  %v2722_v26 = vpop.eup %2248  ;;  %2250 = vcosq.f32 %v361_v12  ;;  %v433_v52 = vadd.s32 %v2631_v25, %v2628_v24  ;;  %v360_v35 = vsel %vm275_vm3, %v359_v27, %v2583_v32 }
  0x95   :  { %v270_v21 = vsel %vm268_vm11, %v269_v28, %v2247_v4  ;;  %v685_v48 = vsel %vm683_vm0, %v269_v28, %v2247_v4  ;;  %2252 = vsinq.f32 %v361_v12  ;;  %v449_v4 = vsub.s32 32, %v448_v30 }
  0x96   :  { %v267_v42 = vsel %vm265_vm12, %v2245_v38, %v266_v40  ;;  %v682_v36 = vsel %vm680_vm13, %v2245_v38, %v266_v40  ;;  %v542_v38 = vadd.s32 536870912, %v541_v3  ;;  %v454_v28 = vadd.s32 127, %v453_v37 }
  0x97   :  { %v271_v33 = vsel %vm264_vm15, %v267_v42, %v270_v21  ;;  %v686_v34 = vsel %vm679_vm2, %v682_v36, %v685_v48  ;;  %v1037_v8 = vmul.f32 %v2722_v26, %v2722_v26  ;;  %v2756_v21 = vstv %s2115_s11 }
  0x98   :  { %v272_v15 = vsel %vm261_vm14, nan, %v271_v33  ;;  %v687_v0 = vsel %vm261_vm14, nan, %v686_v34  ;;  %v2752_v40 = vshrl.u32 %v542_v38, 30  ;;  %3702 = vst [vmem:[#allocation7_spill] sm:$0xff] %v2756_v21  ;;  %v2758_v63 = vstv %s2116_s12 }
  0x99   :  { %v997_v11 = vmul.f32 %v2722_v26, %v272_v15  ;;  %v1001_v39 = vmul.f32 %v687_v0, %v687_v0  ;;  %3703 = vst [vmem:[#allocation8_spill] sm:$0xff] %v2758_v63  ;;  %v1033_v24 = vmul.f32 %v687_v0, %v272_v15  ;;  %v1110_v25 = vand.u32 2139095040, %v2405_v50 }
  0x9a   :  { %v362_v16 = vsel %vm2734_vm5, 0, %v360_v35  ;;  %v450_v42 = vshll.u32 %v2681_v58, %v448_v30  ;;  %v451_v36 = vshrl.u32 %v433_v52, %v449_v4  ;;  %v455_v32 = vshll.u32 %v454_v28, 23 }
  0x9b   :  { %v1005_v6 = vmul.f32 %v997_v11, %v997_v11  ;;  %v94_v33 = vmul.f32 %v2756_v21, %v2397_v44  ;;  %v99_v19 = vmul.f32 %v2758_v63, %v2405_v50  ;;  %v544_v29 = vshll.u32 %v2752_v40, 30 }
  0x9c   :  { %v1041_v48 = vsub.f32 1.0, %v1037_v8  ;;  %v2771_v15 = vmul.f32 %v2756_v21, %v2399_v45  ;;  %v2775_v41 = vmul.f32 %v2758_v63, %v2407_v51  ;;  %v112_v58 = vmul.f32 %v2758_v63, %v2397_v44 }
  0x9d   :  { %v1009_v17 = vadd.f32 %v1005_v6, %v1001_v39  ;;  %v116_v34 = vmul.f32 %v2756_v21, %v2405_v50  ;;  %v2783_v0 = vmul.f32 %v2756_v21, %v2401_v46  ;;  %v2787_v2 = vmul.f32 %v2758_v63, %v2415_v54 }
  0x9e   :  { %v366_v9 = vadd.s32 3, %v362_v16  ;;  %v1045_v11 = vmul.f32 %v1041_v48, %v1033_v24  ;;  %v452_v39 = vor.u32 %v451_v36, %v450_v42  ;;  %v456_v30 = vor.u32 4788187, %v455_v32 }
  0x9f   :  { %2254 = vrcp.f32 %v1009_v17  ;;  %3704 = vst [vmem:[#allocation9_spill] sm:$0xff] %v2783_v0  ;;  %3705 = vst [vmem:[#allocation10_spill] sm:$0xff] %v2787_v2  ;;  %v1111_v6 = vshrl.u32 %v1110_v25, 23  ;;  %v103_v12 = vsub.f32 %v94_v33, %v99_v19  ;;  %v113_v37 = vmul.f32 %v2758_v63, %v2399_v45 }
  0xa0   :  { %v117_v27 = vmul.f32 %v2756_v21, %v2407_v51  ;;  %v2793_v38 = vsub.s32 %v541_v3, %v544_v29  ;;  %v2796_v52 = vstv %s2747_s13  ;;  %v120_v4 = vadd.f32 %v116_v34, %v112_v58 }
  0xa1   :  { %3706 = vst [vmem:[#allocation11_spill] sm:$0xff] %v2796_v52  ;;  %v2798_v28 = vstv %s2114_s14  ;;  %v2157_v35 = vadd.s32 4294967169, %v1111_v6  ;;  %v2251_v8 = vpop.eup %2250  ;;  %v3708_v42 = vsub.f32 %v2413_v53, %v2429_v59  ;;  %v367_v3 = vand.u32 3, %v366_v9 }
  0xa2   :  { %3707 = vst [vmem:[#allocation12_spill] sm:$0xff] %v2798_v28  ;;  %v2253_v32 = vpop.eup %2252  ;;  %v457_v33 = vand.u32 2147483647, %v456_v30  ;;  %v459_v19 = vcvt.s32.f32 %v452_v39  ;;  %v781_v29 = vand.u32 3, %v362_v16  ;;  %v108_v34 = vadd.f32 %v2796_v52, %v103_v12 }
  0xa3   :  { %v145_v36 = vadd.f32 %v2575_v22, %v3708_v42  ;;  %v1117_v48 = vadd.s32 1, %v2157_v35  ;;  %v2809_v6 = vadd.f32 %v117_v27, %v113_v37  ;;  %v3709_v24 = vsub.f32 %v2420_v56, %v2432_v60 }
  0xa4   :  { %v547_v53 = vsub.s32 0, %v2793_v38  ;;  %v125_v59 = vadd.f32 %v2798_v28, %v120_v4  ;;  %v3664_v30 = vand.u32 2147483647, %v2405_v50  ;;  %vm369_vm7 = vcmp.eq.s32.totalorder %v367_v3, 0 }
  0xa5   :  { %v146_v25 = vadd.f32 %v2575_v22, %v3709_v24  ;;  %vm1118_vm6 = vcmp.gt.s32.totalorder %v1117_v48, 0  ;;  %2256 = vtanh.f32 %v145_v36  ;;  %v370_v16 = vxor.u32 2147483648, %v2253_v32 }
  0xa6   :  { %v373_v39 = vxor.u32 2147483648, %v2251_v8  ;;  %vm372_vm8 = vcmp.eq.s32.totalorder %v367_v3, 2  ;;  %v460_v56 = vmul.f32 %v459_v19, %v457_v33  ;;  %vm786_vm9 = vcmp.eq.s32.totalorder %v781_v29, 2 }
  0xa7   :  { %2258 = vtanh.f32 %v146_v25  ;;  %v2138_v12 = vmin.u32 %v547_v53, %v2793_v38  ;;  %vm783_vm10 = vcmp.eq.s32.totalorder %v781_v29, 0  ;;  %vm365_vm11 = vweird.f32 %v2457_v13 }
  0xa8   :  { %vm368_vm12 = vcmp.lt.s32.totalorder %v367_v3, 2  ;;  %v463_v37 = vsub.s32 4, %v2674_v18  ;;  %v371_v4 = vsel %vm369_vm7, %v2251_v8, %v370_v16  ;;  %v374_v35 = vsel %vm372_vm8, %v373_v39, %v2253_v32 }
  0xa9   :  { %vm782_vm13 = vcmp.lt.s32.totalorder %v781_v29, 2  ;;  %v788_v24 = vsel %vm786_vm9, %v373_v39, %v2253_v32  ;;  %v461_v42 = vxor.u32 2147483648, %v460_v56  ;;  %v785_v36 = vsel %vm783_vm10, %v2251_v8, %v370_v16 }
  0xaa   :  { %v3710_v19 = vand.u32 2147483647, %v2460_v14  ;;  %vm379_vm15 = vcmp.lt.s32.totalorder %v2460_v14, 0  ;;  %v549_v3 = vclz %v2138_v12  ;;  %v375_v53 = vsel %vm368_vm12, %v371_v4, %v374_v35 }
  0xab   :  { %v464_v32 = vsel %vm379_vm15, %v463_v37, %v2674_v18  ;;  %vm483_vm0 = vcmp.lt.s32.totalorder %v2553_v43, 0  ;;  %v567_v8 = vsub.s32 4, %v2752_v40  ;;  %v462_v39 = vsel %vm379_vm15, %v461_v42, %v460_v56 }
  0xac   :  { %v2255_v58 = vpop.eup %2254  ;;  %vm2829_vm14 = vcmp.le.f32.partialorder %v3710_v19, 0.7853982  ;;  %v2841_v19 = vstv %s2820_s16  ;;  %v2139_v10 = vadd.s32 4294967294, %v549_v3  ;;  %v1114_v18 = vand.u32 8388607, %v3664_v30 }
  0xad   :  { %v1017_v9 = vmul.f32 %v2255_v58, %v1009_v17  ;;  %v1119_v17 = vsel %vm1118_vm6, %v1117_v48, 0  ;;  %3714 = vst [vmem:[#allocation14_spill] sm:$0xff] %v2841_v19  ;;  %v2847_v37 = vsel %vm365_vm11, nan, %v375_v53  ;;  %v2860_v56 = vsel %vm483_vm0, %v567_v8, %v2752_v40 }
  0xae   :  { %v1121_v33 = vand.u32 31, %v1119_v17  ;;  %vm2140_vm1 = vcmp.lt.s32.totalorder %v2139_v10, 0  ;;  %vm2895_vm2 = vcmp.le.f32.partialorder %v481_v31, 0.7853982  ;;  %vm469_vm15 = vweird.f32 %v2460_v14 }
  0xaf   :  { %v1021_v60 = vsub.f32 2.0, %v1017_v9 }
  0xb0   :  { %v1122_v23 = vsub.s32 32, %v1121_v33  ;;  %v1124_v40 = vshll.u32 %v3671_v49, %v1121_v33  ;;  %v1127_v48 = vshll.u32 %v3669_v1, %v1121_v33  ;;  %v1130_v8 = vshll.u32 %v3667_v5, %v1121_v33 }
  0xb1   :  { %v1025_v27 = vmul.f32 %v2255_v58, %v1021_v60  ;;  %v2838_v60 = vstv %s2818_s15 }
  0xb2   :  { %3713 = vst [vmem:[#allocation13_spill] sm:$0xff] %v2838_v60  ;;  %v2867_v42 = vpop.eup %2256  ;;  %v1128_v13 = vshrl.u32 %v3667_v5, %v1122_v23 }
  0xb3   :  { %v1029_v25 = vmul.f32 %v2722_v26, %v1025_v27  ;;  %v1049_v58 = vmul.f32 %v1045_v11, %v1025_v27  ;;  %v789_v26 = vsel %vm782_vm13, %v785_v36, %v788_v24  ;;  %v2851_v27 = vsel %vm2829_vm14, 0, %v464_v32 }
  0xb4   :  { %v1214_v24 = vand.u32 2139095040, %v2407_v51  ;;  %v1125_v36 = vshrl.u32 %v3669_v1, %v1122_v23  ;;  %v2882_v53 = vpop.eup %2258  ;;  %v1120_v32 = vshrl.u32 %v1119_v17, 5 }
  0xb5   :  { %v1053_v29 = vmul.f32 %v1029_v25, %v108_v34  ;;  %v1057_v9 = vmul.f32 %v1049_v58, %v125_v59  ;;  %v1065_v16 = vmul.f32 %v1049_v58, %v108_v34  ;;  %v1069_v11 = vmul.f32 %v1029_v25, %v125_v59 }
  0xb6   :  { %v2855_v34 = vadd.s32 %v2703_v20, %v2716_v62  ;;  %v465_v20 = vsel %vm2829_vm14, %v2460_v14, %v462_v39  ;;  %v2874_v62 = vsel %vm365_vm11, nan, %v789_v26  ;;  %v1115_v58 = vor.u32 8388608, %v1114_v18 }
  0xb7   :  { %v1061_v12 = vsub.f32 %v1053_v29, %v1057_v9  ;;  %v1073_v59 = vadd.f32 %v1069_v11, %v1065_v16  ;;  %v1131_v9 = vshrl.u32 %v3665_v7, %v1122_v23  ;;  %v1215_v16 = vshrl.u32 %v1214_v24, 23 }
  0xb8   :  { %2260 = vcosq.f32 %v465_v20  ;;  %v1126_v39 = vor.u32 %v1125_v36, %v1124_v40  ;;  %v1133_v11 = vshll.u32 %v3665_v7, %v1121_v33  ;;  %v552_v18 = vsel %vm2140_vm1, 0, %v2139_v10 }
  0xb9   :  { %v2863_v4 = vmul.f32 %v2838_v60, %v1061_v12  ;;  %v1095_v35 = vmul.f32 %v2841_v19, %v1061_v12  ;;  %v2879_v25 = vmul.f32 %v2841_v19, %v1073_v59  ;;  %v1091_v3 = vmul.f32 %v2838_v60, %v1073_v59 }
  0xba   :  { %v1129_v12 = vor.u32 %v1128_v13, %v1127_v48  ;;  %2262 = vsinq.f32 %v465_v20  ;;  %v1132_v59 = vor.u32 %v1131_v9, %v1130_v8  ;;  %v1123_v26 = vshrl.u32 %v3671_v49, %v1122_v23 }
  0xbb   :  { %3715 = vst [vmem:[#allocation15_spill] sm:$0xff] %v2863_v4  ;;  %3716 = vst [vmem:[#allocation16_spill] sm:$0xff] %v2879_v25  ;;  %v2889_v29 = vadd.f32 %v1095_v35, %v1091_v3  ;;  %v3720_v35 = vmov 920167782   ;;  %v3721_v40 = vmov 1326507024  }
  0xbc   :  { %v1134_v3 = vshrl.u32 %v3720_v35, %v1122_v23  ;;  %v1136_v24 = vshll.u32 %v3720_v35, %v1121_v33  ;;  %v1137_v36 = vshrl.u32 %v3721_v40, %v1122_v23  ;;  %vm1139_vm3 = vcmp.lt.s32.totalorder %v1120_v32, 1 }
  0xbd   :  { %3717 = vst [vmem:[#allocation17_spill] sm:$0xff] %v2889_v29  ;;  %vm1141_vm4 = vcmp.lt.s32.totalorder %v1120_v32, 3  ;;  %v1155_v20 = vshll.u32 %v1115_v58, 8  ;;  %v2161_v13 = vadd.s32 4294967169, %v1215_v16  ;;  %vm1140_vm5 = vcmp.lt.s32.totalorder %v1120_v32, 2 }
  0xbe   :  { %v1135_v48 = vor.u32 %v1134_v3, %v1133_v11  ;;  %v1138_v31 = vor.u32 %v1137_v36, %v1136_v24  ;;  %vm1142_vm6 = vcmp.lt.s32.totalorder %v1120_v32, 4  ;;  %v1147_v30 = vsel %vm1139_vm3, %v1126_v39, %v1129_v12 }
  0xbf   :  { %v557_v7 = vsub.s32 4294967266, %v552_v18  ;;  %v1144_v10 = vsel %vm1142_vm6, %v1132_v59, 2102212464  ;;  %v1151_v9 = vsel %vm1139_vm3, %v1129_v12, %v1132_v59  ;;  %v1143_v5 = vsel %vm1139_vm3, %v1123_v26, %v1126_v39 }
  0xc0   :  { %v1148_v8 = vsel %vm1142_vm6, %v1135_v48, 920167782  ;;  %v1145_v1 = vsel %vm1141_vm4, %v1129_v12, %v1144_v10  ;;  %v1152_v49 = vsel %vm1142_vm6, %v1138_v31, 1326507024  ;;  %v998_v23 = vmul.f32 %v2867_v42, %v2847_v37 }
  0xc1   :  { %v1149_v33 = vsel %vm1141_vm4, %v1132_v59, %v1148_v8  ;;  %v1153_v16 = vsel %vm1141_vm4, %v1135_v48, %v1152_v49  ;;  %v1221_v11 = vadd.s32 1, %v2161_v13  ;;  %v553_v3 = vsub.s32 32, %v552_v18 }
  0xc2   :  { %v1150_v58 = vsel %vm1140_vm5, %v1147_v30, %v1149_v33  ;;  %v1154_v24 = vsel %vm1140_vm5, %v1151_v9, %v1153_v16  ;;  %v470_v26 = vadd.s32 3, %v2851_v27  ;;  %v1146_v39 = vsel %vm1140_vm5, %v1143_v5, %v1145_v1 }
  0xc3   :  { %v2911_v36 = vmul.u32.u64.low %v1155_v20, %v1150_v58  ;;  %v2912_v2 = vmul.u32.u64.high %v1155_v20, %v1150_v58, %v2911_v36  ;;  %v2917_v12 = vmul.u32.u64.low %v1155_v20, %v1154_v24  ;;  %v2918_v59 = vmul.u32.u64.high %v1155_v20, %v1154_v24, %v2917_v12 }
  0xc4   :  { %v3722_v30 = vsub.f32 %v2771_v15, %v2775_v41  ;;  %v2928_v48 = vmul.f32 %v2758_v63, %v2401_v46  ;;  %v558_v13 = vadd.s32 127, %v557_v7  ;;  %v570_v31 = vsel %vm2895_vm2, 0, %v2860_v56 }
  0xc5   :  { %v1002_v1 = vmul.f32 %v2874_v62, %v2874_v62  ;;  %v1006_v5 = vmul.f32 %v998_v23, %v998_v23  ;;  %v3674_v32 = vand.u32 2147483647, %v2407_v51  ;;  %vm1222_vm7 = vcmp.gt.s32.totalorder %v1221_v11, 0  ;;  %v2939_v9 = vpop.eup %2260 }
  0xc6   :  { %v2924_v49 = vadd.f32 %v2796_v52, %v3722_v30  ;;  %v554_v15 = vshll.u32 %v2793_v38, %v552_v18  ;;  %v555_v41 = vshrl.u32 %v2855_v34, %v553_v3  ;;  %v1162_v10 = vmul.u32 %v1155_v20, %v1146_v39 }
  0xc7   :  { %v1165_v8 = vadd.s32 1, %v2912_v2  ;;  %v2943_v7 = vmul.f32 %v2756_v21, %v2415_v54  ;;  %v2947_v56 = vadd.f32 %v2798_v28, %v2809_v6  ;;  %v3724_v33 = vsub.f32 %v2423_v57, %v2435_v61  ;;  %v2955_v34 = vpop.eup %2262 }
  0xc8   :  { %v2953_v18 = vand.u32 3, %v470_v26  ;;  %v559_v20 = vshll.u32 %v558_v13, 23  ;;  %v574_v23 = vadd.s32 3, %v570_v31  ;;  %vm1164_vm8 = vc.u32 %v2918_v59, %v2911_v36 }
  0xc9   :  { %3723 = vst [vmem:[#allocation18_spill] sm:$0xff] %v2943_v7  ;;  %v147_v38 = vadd.f32 %v2575_v22, %v3724_v33  ;;  %v1223_v58 = vsel %vm1222_vm7, %v1221_v11, 0  ;;  %v2960_v16 = vand.u32 3, %v2851_v27  ;;  %v2964_v6 = vmul.f32 %v2867_v42, %v2867_v42 }
  0xca   :  { %v1166_v57 = vsel %vm1164_vm8, %v1165_v8, %v2912_v2  ;;  %v1218_v61 = vand.u32 8388607, %v3674_v32  ;;  %v2969_v22 = vor.u32 %v555_v41, %v554_v15  ;;  %v2971_v3 = vadd.f32 %v1006_v5, %v1002_v1 }
  0xcb   :  { %v1167_v24 = vadd.s32 %v1166_v57, %v1162_v10  ;;  %v1225_v26 = vand.u32 31, %v1223_v58  ;;  %2264 = vtanh.f32 %v147_v38  ;;  %vm473_vm9 = vcmp.eq.s32.totalorder %v2953_v18, 0 }
  0xcc   :  { %vm476_vm10 = vcmp.eq.s32.totalorder %v2953_v18, 2  ;;  %v2975_v27 = vand.u32 3, %v570_v31  ;;  %v560_v11 = vor.u32 4788187, %v559_v20  ;;  %v2977_v39 = vand.u32 3, %v574_v23 }
  0xcd   :  { %v2981_v2 = vmul.f32 %v2874_v62, %v2847_v37  ;;  %v2985_v12 = vmul.f32 %v2882_v53, %v2882_v53  ;;  %v477_v30 = vxor.u32 2147483648, %v2939_v9  ;;  %v1168_v13 = vadd.s32 536870912, %v1167_v24 }
  0xce   :  { %v1219_v1 = vor.u32 8388608, %v1218_v61  ;;  %v1226_v5 = vsub.s32 32, %v1225_v26  ;;  %v563_v15 = vcvt.s32.f32 %v2969_v22  ;;  %vm889_vm11 = vcmp.eq.s32.totalorder %v2960_v16, 2 }
  0xcf   :  { %2266 = vrcp.f32 %v2971_v3  ;;  %v3725_v41 = vmov 683565275   ;;  %vm886_vm12 = vcmp.eq.s32.totalorder %v2960_v16, 0  ;;  %v2994_v62 = vshrl.u32 %v1168_v13, 30 }
  0xd0   :  { %v1228_v37 = vshll.u32 %v3725_v41, %v1225_v26  ;;  %v3726_v10 = vmov 2475754826   ;;  %v3727_v38 = vmov 2131351028   ;;  %vm472_vm13 = vcmp.lt.s32.totalorder %v2953_v18, 2 }
  0xd1   :  { %v1229_v8 = vshrl.u32 %v3726_v10, %v1226_v5  ;;  %v1231_v33 = vshll.u32 %v3726_v10, %v1225_v26  ;;  %v1232_v20 = vshrl.u32 %v3727_v38, %v1226_v5  ;;  %v474_v23 = vxor.u32 2147483648, %v2955_v34 }
  0xd2   :  { %v561_v57 = vand.u32 2147483647, %v560_v11  ;;  %v1224_v61 = vshrl.u32 %v1223_v58, 5  ;;  %v1234_v22 = vshll.u32 %v3727_v38, %v1225_v26  ;;  %v478_v32 = vsel %vm476_vm10, %v477_v30, %v2955_v34 }
  0xd3   :  { %v1170_v13 = vshll.u32 %v2994_v62, 30  ;;  %v3006_v31 = vshll.u32 %v1219_v1, 8  ;;  %v1318_v63 = vand.u32 2139095040, %v2415_v54  ;;  %v1227_v21 = vshrl.u32 %v3725_v41, %v1226_v5 }
  0xd4   :  { %v1230_v28 = vor.u32 %v1229_v8, %v1228_v37  ;;  %v3728_v52 = vmov 2102212464   ;;  %vm885_vm14 = vcmp.lt.s32.totalorder %v2960_v16, 2  ;;  %v1233_v29 = vor.u32 %v1232_v20, %v1231_v33 }
  0xd5   :  { %v1235_v0 = vshrl.u32 %v3728_v52, %v1226_v5  ;;  %v1237_v11 = vshll.u32 %v3728_v52, %v1225_v26  ;;  %v3013_v58 = vsub.s32 %v1167_v24, %v1170_v13  ;;  %v1238_v25 = vshrl.u32 %v3720_v35, %v1226_v5 }
  0xd6   :  { %v1240_v4 = vshll.u32 %v3720_v35, %v1225_v26  ;;  %v1241_v19 = vshrl.u32 %v3721_v40, %v1226_v5  ;;  %vm1243_vm1 = vcmp.lt.s32.totalorder %v1224_v61, 1  ;;  %vm1246_vm3 = vcmp.lt.s32.totalorder %v1224_v61, 4 }
  0xd7   :  { %v1236_v1 = vor.u32 %v1235_v0, %v1234_v22  ;;  %v475_v37 = vsel %vm473_vm9, %v2939_v9, %v474_v23  ;;  %v1173_v8 = vsub.s32 0, %v3013_v58  ;;  %v1239_v24 = vor.u32 %v1238_v25, %v1237_v11 }
  0xd8   :  { %vm1245_vm4 = vcmp.lt.s32.totalorder %v1224_v61, 3  ;;  %v1242_v33 = vor.u32 %v1241_v19, %v1240_v4  ;;  %vm1244_vm5 = vcmp.lt.s32.totalorder %v1224_v61, 2  ;;  %v1247_v20 = vsel %vm1243_vm1, %v1227_v21, %v1230_v28  ;;  %v3026_v60 = vpop.eup %2264 }
  0xd9   :  { %v1248_v26 = vsel %vm1246_vm3, %v1236_v1, 2102212464  ;;  %v2158_v13 = vmin.u32 %v1173_v8, %v3013_v58  ;;  %v1251_v0 = vsel %vm1243_vm1, %v1230_v28, %v1233_v29  ;;  %v1252_v5 = vsel %vm1246_vm3, %v1239_v24, 920167782 }
  0xda   :  { %v1255_v22 = vsel %vm1243_vm1, %v1233_v29, %v1236_v1  ;;  %v1249_v47 = vsel %vm1245_vm4, %v1233_v29, %v1248_v26  ;;  %v1253_v7 = vsel %vm1245_vm4, %v1236_v1, %v1252_v5  ;;  %v1256_v25 = vsel %vm1246_vm3, %v1242_v33, 1326507024 }
  0xdb   :  { %v1319_v11 = vshrl.u32 %v1318_v63, 23  ;;  %v564_v19 = vmul.f32 %v563_v15, %v561_v57  ;;  %v891_v21 = vsel %vm889_vm11, %v477_v30, %v2955_v34  ;;  %vm1109_vm6 = vcmp.lt.s32.totalorder %v2405_v50, 0 }
  0xdc   :  { %v1175_v28 = vclz %v2158_v13  ;;  %v888_v8 = vsel %vm886_vm12, %v2939_v9, %v474_v23  ;;  %v1254_v29 = vsel %vm1244_vm5, %v1251_v0, %v1253_v7  ;;  %v1257_v1 = vsel %vm1245_vm4, %v1239_v24, %v1256_v25  ;;  %v2267_v63 = vpop.eup %2266 }
  0xdd   :  { %v2165_v33 = vadd.s32 4294967169, %v1319_v11  ;;  %v479_v15 = vsel %vm472_vm13, %v475_v37, %v478_v32  ;;  %v1250_v34 = vsel %vm1244_vm5, %v1247_v20, %v1249_v47  ;;  %v1258_v30 = vsel %vm1244_vm5, %v1255_v22, %v1257_v1 }
  0xde   :  { %v2159_v57 = vadd.s32 4294967294, %v1175_v28  ;;  %v3729_v26 = vand.u32 2147483647, %v2405_v50  ;;  %v3052_v9 = vmul.u32.u64.low %v3006_v31, %v1258_v30  ;;  %v3053_v7 = vmul.u32.u64.high %v3006_v31, %v1258_v30, %v3052_v9 }
  0xdf   :  { %v3056_v23 = vmul.u32.u64.low %v3006_v31, %v1254_v29  ;;  %v3057_v24 = vmul.u32.u64.high %v3006_v31, %v1254_v29, %v3056_v23  ;;  %v565_v32 = vxor.u32 2147483648, %v564_v19  ;;  %v1163_v47 = vadd.s32 %v2911_v36, %v2918_v59 }
  0xe0   :  { %vm3047_vm7 = vcmp.le.f32.partialorder %v3729_v26, 0.7853982  ;;  %vm2160_vm8 = vcmp.lt.s32.totalorder %v2159_v57, 0  ;;  %v1325_v18 = vadd.s32 1, %v2165_v33  ;;  %v892_v61 = vsel %vm885_vm14, %v888_v8, %v891_v21 }
  0xe1   :  { %v1018_v37 = vmul.f32 %v2267_v63, %v2971_v3  ;;  %v1178_v20 = vsel %vm2160_vm8, 0, %v2159_v57  ;;  %v1193_v0 = vsub.s32 4, %v2994_v62  ;;  %v3067_v5 = vsel %vm469_vm15, nan, %v479_v15 }
  0xe2   :  { %v1179_v22 = vsub.s32 32, %v1178_v20  ;;  %v1183_v25 = vsub.s32 4294967266, %v1178_v20  ;;  %v1266_v11 = vmul.u32 %v3006_v31, %v1250_v34  ;;  %v1180_v36 = vshll.u32 %v3013_v58, %v1178_v20 }
  0xe3   :  { %vm1268_vm9 = vc.u32 %v3053_v7, %v3056_v23  ;;  %v1269_v59 = vadd.s32 1, %v3057_v24  ;;  %vm1326_vm10 = vcmp.gt.s32.totalorder %v1325_v18, 0  ;;  %v566_v16 = vsel %vm483_vm0, %v565_v32, %v564_v19 }
  0xe4   :  { %v1181_v3 = vshrl.u32 %v1163_v47, %v1179_v22  ;;  %v1184_v21 = vadd.s32 127, %v1183_v25  ;;  %v3692_v28 = vand.u32 2147483647, %v2415_v54  ;;  %v3732_v8 = vsub.f32 1.0, %v2964_v6 }
  0xe5   :  { %v1194_v31 = vsel %vm1109_vm6, %v1193_v0, %v2994_v62  ;;  %v1270_v58 = vsel %vm1268_vm9, %v1269_v59, %v3057_v24  ;;  %v1327_v1 = vsel %vm1326_vm10, %v1325_v18, 0  ;;  %v3087_v33 = vsel %vm469_vm15, nan, %v892_v61 }
  0xe6   :  { %v3079_v29 = vmul.f32 %v3732_v8, %v2981_v2  ;;  %v999_v19 = vmul.f32 %v2882_v53, %v3067_v5  ;;  %v1022_v15 = vsub.f32 2.0, %v1018_v37  ;;  %2268 = vtanh.f32 %v2397_v44 }
  0xe7   :  { %v3095_v6 = vsel %vm2895_vm2, %v2553_v43, %v566_v16  ;;  %v1182_v2 = vor.u32 %v1181_v3, %v1180_v36  ;;  %v1185_v62 = vshll.u32 %v1184_v21, 23  ;;  %v1271_v57 = vadd.s32 %v1270_v58, %v1266_v11 }
  0xe8   :  { %2270 = vtanh.f32 %v2399_v45  ;;  %v3100_v14 = vsel %vm3047_vm7, 0, %v1194_v31  ;;  %v1322_v34 = vand.u32 8388607, %v3692_v28  ;;  %v1329_v30 = vand.u32 31, %v1327_v1 }
  0xe9   :  { %2272 = vtanh.f32 %v2401_v46  ;;  %v1186_v26 = vor.u32 4788187, %v1185_v62  ;;  %v1189_v9 = vcvt.s32.f32 %v1182_v2  ;;  %v1272_v17 = vadd.s32 536870912, %v1271_v57 }
  0xea   :  { %2274 = vcosq.f32 %v3095_v6  ;;  %v3108_v24 = vmul.f32 %v3087_v33, %v3087_v33  ;;  %v3110_v32 = vmul.f32 %v999_v19, %v999_v19  ;;  %v3112_v47 = vmul.f32 %v2267_v63, %v1022_v15 }
  0xeb   :  { %v1187_v18 = vand.u32 2147483647, %v1186_v26  ;;  %v3115_v61 = vadd.s32 3, %v3100_v14  ;;  %vm1213_vm0 = vcmp.lt.s32.totalorder %v2407_v51, 0  ;;  %v1273_v37 = vshrl.u32 %v1272_v17, 30 }
  0xec   :  { %v1330_v20 = vsub.s32 32, %v1329_v30  ;;  %v3119_v0 = vadd.s32 %v3056_v23, %v3053_v7  ;;  %v1323_v22 = vor.u32 8388608, %v1322_v34  ;;  %v1332_v25 = vshll.u32 %v3725_v41, %v1329_v30 }
  0xed   :  { %v1190_v36 = vmul.f32 %v1189_v9, %v1187_v18  ;;  %v1274_v59 = vshll.u32 %v1273_v37, 30  ;;  %v1335_v63 = vshll.u32 %v3726_v10, %v1329_v30  ;;  %v1338_v16 = vshll.u32 %v3727_v38, %v1329_v30 }
  0xee   :  { %v1333_v3 = vshrl.u32 %v3726_v10, %v1330_v20  ;;  %v1336_v21 = vshrl.u32 %v3727_v38, %v1330_v20  ;;  %v1339_v8 = vshrl.u32 %v3728_v52, %v1330_v20  ;;  %v1341_v7 = vshll.u32 %v3728_v52, %v1329_v30 }
  0xef   :  { %v1191_v23 = vxor.u32 2147483648, %v1190_v36  ;;  %v3129_v31 = vsub.s32 %v1271_v57, %v1274_v59  ;;  %v1328_v58 = vshrl.u32 %v1327_v1, 5  ;;  %v1342_v19 = vshrl.u32 %v3720_v35, %v1330_v20 }
  0xf0   :  { %v1297_v15 = vsub.s32 4, %v1273_v37  ;;  %v1331_v2 = vshrl.u32 %v3725_v41, %v1330_v20  ;;  %v1334_v62 = vor.u32 %v1333_v3, %v1332_v25  ;;  %v3133_v34 = vshll.u32 %v1323_v22, 8 }
  0xf1   :  { %v1192_v26 = vsel %vm1109_vm6, %v1191_v23, %v1190_v36  ;;  %v3733_v9 = vand.u32 2147483647, %v2407_v51  ;;  %v1277_v57 = vsub.s32 0, %v3129_v31  ;;  %v1337_v1 = vor.u32 %v1336_v21, %v1335_v63 }
  0xf2   :  { %v1340_v18 = vor.u32 %v1339_v8, %v1338_v16  ;;  %v1195_v59 = vsel %vm3047_vm7, %v2405_v50, %v1192_v26  ;;  %v1343_v25 = vor.u32 %v1342_v19, %v1341_v7  ;;  %v1344_v22 = vshll.u32 %v3720_v35, %v1329_v30 }
  0xf3   :  { %vm3139_vm2 = vcmp.le.f32.partialorder %v3733_v9, 0.7853982  ;;  %v1345_v3 = vshrl.u32 %v3721_v40, %v1330_v20  ;;  %v3149_v36 = vpop.eup %2268  ;;  %2276 = vcosq.f32 %v1195_v59  ;;  %v2162_v23 = vmin.u32 %v1277_v57, %v3129_v31 }
  0xf4   :  { %vm1347_vm11 = vcmp.lt.s32.totalorder %v1328_v58, 1  ;;  %v1422_v9 = vand.u32 2139095040, %v2417_v55  ;;  %v1298_v63 = vsel %vm1213_vm0, %v1297_v15, %v1273_v37  ;;  %vm1349_vm12 = vcmp.lt.s32.totalorder %v1328_v58, 3 }
  0xf5   :  { %v1346_v16 = vor.u32 %v1345_v3, %v1344_v22  ;;  %vm1350_vm13 = vcmp.lt.s32.totalorder %v1328_v58, 4  ;;  %v3155_v13 = vpop.eup %2270  ;;  %2278 = vsinq.f32 %v1195_v59  ;;  %v1279_v30 = vclz %v2162_v23 }
  0xf6   :  { %vm1348_vm14 = vcmp.lt.s32.totalorder %v1328_v58, 2  ;;  %v1351_v20 = vsel %vm1347_vm11, %v1331_v2, %v1334_v62  ;;  %v3157_v21 = vpop.eup %2272  ;;  %v1352_v8 = vsel %vm1350_vm13, %v1340_v18, 2102212464  ;;  %v1355_v7 = vsel %vm1347_vm11, %v1334_v62, %v1337_v1 }
  0xf7   :  { %v1356_v19 = vsel %vm1350_vm13, %v1343_v25, 920167782  ;;  %v1359_v26 = vsel %vm1347_vm11, %v1337_v1, %v1340_v18  ;;  %v3159_v57 = vpop.eup %2274  ;;  %v2163_v4 = vadd.s32 4294967294, %v1279_v30  ;;  %v1353_v37 = vsel %vm1349_vm12, %v1337_v1, %v1352_v8 }
  0xf8   :  { %v1357_v15 = vsel %vm1349_vm12, %v1340_v18, %v1356_v19  ;;  %v1360_v22 = vsel %vm1350_vm13, %v1346_v16, 1326507024  ;;  %v1354_v3 = vsel %vm1348_vm14, %v1351_v20, %v1353_v37  ;;  %v1423_v23 = vshrl.u32 %v1422_v9, 23 }
  0xf9   :  { %v1358_v59 = vsel %vm1348_vm14, %v1355_v7, %v1357_v15  ;;  %v1361_v2 = vsel %vm1349_vm12, %v1343_v25, %v1360_v22  ;;  %vm2164_vm15 = vcmp.lt.s32.totalorder %v2163_v4, 0  ;;  %v1300_v1 = vsel %vm3139_vm2, 0, %v1298_v63 }
  0xfa   :  { %v1362_v62 = vsel %vm1348_vm14, %v1359_v26, %v1361_v2  ;;  %v3168_v28 = vmul.u32.u64.low %v3133_v34, %v1358_v59  ;;  %v3169_v11 = vmul.u32.u64.high %v3133_v34, %v1358_v59, %v3168_v28  ;;  %v1282_v30 = vsel %vm2164_vm15, 0, %v2163_v4 }
  0xfb   :  { %v3174_v18 = vmul.u32.u64.low %v3133_v34, %v1362_v62  ;;  %v3175_v16 = vmul.u32.u64.high %v3133_v34, %v1362_v62, %v3174_v18  ;;  %v1283_v20 = vsub.s32 32, %v1282_v30  ;;  %v1284_v8 = vshll.u32 %v3129_v31, %v1282_v30 }
  0xfc   :  { %v1287_v25 = vsub.s32 4294967266, %v1282_v30  ;;  %v2169_v9 = vadd.s32 4294967169, %v1423_v23  ;;  %v3180_v58 = vadd.f32 %v3110_v32, %v3108_v24  ;;  %v3183_v7 = vand.u32 3, %v3115_v61 }
  0xfd   :  { %v1370_v4 = vmul.u32 %v3133_v34, %v1354_v3  ;;  %v3736_v63 = vand.u32 2147483647, %v2417_v55  ;;  %v1285_v26 = vshrl.u32 %v3119_v0, %v1283_v20  ;;  %v1373_v15 = vadd.s32 1, %v3169_v11 }
  0xfe   :  { %v1288_v37 = vadd.s32 127, %v1287_v25  ;;  %v1429_v31 = vadd.s32 1, %v2169_v9  ;;  %2280 = vsinq.f32 %v3095_v6  ;;  %v3193_v24 = vmul.f32 %v2867_v42, %v3112_v47 }
  0xff   :  { %v1426_v19 = vand.u32 8388607, %v3736_v63  ;;  %v1304_v32 = vadd.s32 3, %v1300_v1  ;;  %vm1372_vm1 = vc.u32 %v3175_v16, %v3168_v28  ;;  %v1286_v61 = vor.u32 %v1285_v26, %v1284_v8 }
 0x100   :  { %v1289_v34 = vshll.u32 %v1288_v37, 23  ;;  %v1374_v22 = vsel %vm1372_vm1, %v1373_v15, %v3169_v11  ;;  %vm1430_vm3 = vcmp.gt.s32.totalorder %v1429_v31, 0  ;;  %v3197_v3 = vpop.eup %2276  ;;  %2282 = vrcp.f32 %v3180_v58 }
 0x101   :  { %v3202_v0 = vmul.f32 %v3079_v29, %v3112_v47  ;;  %v1375_v6 = vadd.s32 %v1374_v22, %v1370_v4  ;;  %v1431_v59 = vsel %vm1430_vm3, %v1429_v31, 0  ;;  %vm1203_vm4 = vcmp.eq.s32.totalorder %v3183_v7, 0 }
 0x102   :  { %v1290_v42 = vor.u32 4788187, %v1289_v34  ;;  %v1293_v2 = vcvt.s32.f32 %v1286_v61  ;;  %v1427_v23 = vor.u32 8388608, %v1426_v19  ;;  %v3205_v62 = vpop.eup %2278  ;;  %vm1206_vm5 = vcmp.eq.s32.totalorder %v3183_v7, 2 }
 0x103   :  { %v3693_v11 = vxor.u32 2147483648, %v3197_v3  ;;  %v1376_v30 = vadd.s32 536870912, %v1375_v6  ;;  %v1433_v18 = vand.u32 31, %v1431_v59  ;;  %vm1202_vm6 = vcmp.lt.s32.totalorder %v3183_v7, 2 }
 0x104   :  { %v1291_v20 = vand.u32 2147483647, %v1290_v42  ;;  %v3210_v29 = vand.u32 3, %v1304_v32  ;;  %v3213_v47 = vand.u32 3, %v3100_v14  ;;  %v3215_v8 = vand.u32 3, %v1300_v1 }
 0x105   :  { %v3218_v25 = vadd.s32 %v3168_v28, %v3175_v16  ;;  %v3220_v9 = vshrl.u32 %v1376_v30, 30  ;;  %v1432_v4 = vshrl.u32 %v1431_v59, 5  ;;  %v1434_v63 = vsub.s32 32, %v1433_v18 }
 0x106   :  { %v1204_v19 = vxor.u32 2147483648, %v3205_v62  ;;  %v1294_v26 = vmul.f32 %v1293_v2, %v1291_v20  ;;  %v1436_v37 = vshll.u32 %v3725_v41, %v1433_v18  ;;  %v3224_v15 = vshll.u32 %v1427_v23, 8 }
 0x107   :  { %vm1199_vm7 = vweird.f32 %v2405_v50  ;;  %v1208_v28 = vsel %vm1206_vm5, %v3693_v11, %v3205_v62  ;;  %v1378_v14 = vshll.u32 %v3220_v9, 30  ;;  %v1439_v1 = vshll.u32 %v3726_v10, %v1433_v18 }
 0x108   :  { %v1442_v16 = vshll.u32 %v3727_v38, %v1433_v18  ;;  %v1295_v31 = vxor.u32 2147483648, %v1294_v26  ;;  %v1437_v32 = vshrl.u32 %v3726_v10, %v1434_v63  ;;  %v1440_v61 = vshrl.u32 %v3727_v38, %v1434_v63 }
 0x109   :  { %v1443_v34 = vshrl.u32 %v3728_v52, %v1434_v63  ;;  %v3238_v22 = vsub.s32 %v1375_v6, %v1378_v14  ;;  %v1445_v59 = vshll.u32 %v3728_v52, %v1433_v18  ;;  %v1446_v42 = vshrl.u32 %v3720_v35, %v1434_v63 }
 0x10a   :  { %vm1451_vm8 = vcmp.lt.s32.totalorder %v1432_v4, 1  ;;  %v1205_v2 = vsel %vm1203_vm4, %v3197_v3, %v1204_v19  ;;  %v1296_v23 = vsel %vm1213_vm0, %v1295_v31, %v1294_v26  ;;  %v1435_v10 = vshrl.u32 %v3725_v41, %v1434_v63 }
 0x10b   :  { %v1438_v30 = vor.u32 %v1437_v32, %v1436_v37  ;;  %vm1617_vm9 = vcmp.lt.s32.totalorder %v3213_v47, 2  ;;  %v1299_v38 = vsel %vm3139_vm2, %v2407_v51, %v1296_v23  ;;  %v1381_v52 = vsub.s32 0, %v3238_v22  ;;  %v3253_v14 = vpop.eup %2280 }
 0x10c   :  { %v1441_v6 = vor.u32 %v1440_v61, %v1439_v1  ;;  %v1444_v20 = vor.u32 %v1443_v34, %v1442_v16  ;;  %2284 = vcosq.f32 %v1299_v38  ;;  %v1447_v11 = vor.u32 %v1446_v42, %v1445_v59 }
 0x10d   :  { %v1448_v46 = vshll.u32 %v3720_v35, %v1433_v18  ;;  %v1449_v26 = vshrl.u32 %v3721_v40, %v1434_v63  ;;  %2286 = vsinq.f32 %v1299_v38  ;;  %v2166_v41 = vmin.u32 %v1381_v52, %v3238_v22  ;;  %v3260_v17 = vpop.eup %2282 }
 0x10e   :  { %vm1618_vm10 = vcmp.eq.s32.totalorder %v3213_v47, 0  ;;  %vm1621_vm0 = vcmp.eq.s32.totalorder %v3213_v47, 2  ;;  %vm1452_vm2 = vcmp.lt.s32.totalorder %v1432_v4, 2  ;;  %vm1453_vm11 = vcmp.lt.s32.totalorder %v1432_v4, 3 }
 0x10f   :  { %v1450_v37 = vor.u32 %v1449_v26, %v1448_v46  ;;  %vm1454_vm12 = vcmp.lt.s32.totalorder %v1432_v4, 4  ;;  %v1209_v1 = vsel %vm1202_vm6, %v1205_v2, %v1208_v28  ;;  %v1383_v16 = vclz %v2166_v41 }
 0x110   :  { %v1455_v35 = vsel %vm1451_vm8, %v1435_v10, %v1438_v30  ;;  %v1459_v40 = vsel %vm1451_vm8, %v1438_v30, %v1441_v6  ;;  %v1456_v18 = vsel %vm1454_vm12, %v1444_v20, 2102212464  ;;  %v1460_v63 = vsel %vm1454_vm12, %v1447_v11, 920167782 }
 0x111   :  { %v1463_v31 = vsel %vm1451_vm8, %v1441_v6, %v1444_v20  ;;  %v1464_v32 = vsel %vm1454_vm12, %v1450_v37, 1326507024  ;;  %v2167_v61 = vadd.s32 4294967294, %v1383_v16  ;;  %v1457_v34 = vsel %vm1453_vm11, %v1441_v6, %v1456_v18 }
 0x112   :  { %v1461_v59 = vsel %vm1453_vm11, %v1444_v20, %v1460_v63  ;;  %v1465_v46 = vsel %vm1453_vm11, %v1447_v11, %v1464_v32  ;;  %v3269_v42 = vsel %vm1199_vm7, nan, %v1209_v1  ;;  %v1620_v2 = vsel %vm1618_vm10, %v3197_v3, %v1204_v19 }
 0x113   :  { %v1462_v7 = vsel %vm1452_vm2, %v1459_v40, %v1461_v59  ;;  %v1466_v28 = vsel %vm1452_vm2, %v1463_v31, %v1465_v46  ;;  %vm2168_vm13 = vcmp.lt.s32.totalorder %v2167_v61, 0  ;;  %v1458_v23 = vsel %vm1452_vm2, %v1455_v35, %v1457_v34 }
 0x114   :  { %v3278_v10 = vmul.u32.u64.low %v3224_v15, %v1466_v28  ;;  %v3279_v30 = vmul.u32.u64.high %v3224_v15, %v1466_v28, %v3278_v10  ;;  %vm1303_vm14 = vweird.f32 %v2407_v51  ;;  %v1386_v11 = vsel %vm2168_vm13, 0, %v2167_v61 }
 0x115   :  { %v3283_v38 = vmul.u32.u64.low %v3224_v15, %v1462_v7  ;;  %v3284_v52 = vmul.u32.u64.high %v3224_v15, %v1462_v7, %v3283_v38  ;;  %v3737_v6 = vxor.u32 2147483648, %v3197_v3  ;;  %v1387_v4 = vsub.s32 32, %v1386_v11 }
 0x116   :  { %v1388_v20 = vshll.u32 %v3238_v22, %v1386_v11  ;;  %v1391_v26 = vsub.s32 4294967266, %v1386_v11  ;;  %v581_v37 = vxor.u32 2147483648, %v3159_v57  ;;  %v3298_v1 = vmul.f32 %v3193_v24, %v2924_v49 }
 0x117   :  { %v1623_v19 = vsel %vm1621_vm0, %v3737_v6, %v3205_v62  ;;  %vm1306_vm15 = vcmp.lt.s32.totalorder %v3210_v29, 2  ;;  %v1474_v3 = vmul.u32 %v3224_v15, %v1458_v23  ;;  %v1389_v16 = vshrl.u32 %v3218_v25, %v1387_v4 }
 0x118   :  { %v1624_v41 = vsel %vm1617_vm9, %v1620_v2, %v1623_v19  ;;  %v1392_v62 = vadd.s32 127, %v1391_v26  ;;  %vm1476_vm1 = vc.u32 %v3279_v30, %v3283_v38  ;;  %vm577_vm3 = vcmp.eq.s32.totalorder %v2977_v39, 0 }
 0x119   :  { %v3307_v47 = vsel %vm1199_vm7, nan, %v1624_v41  ;;  %vm580_vm4 = vcmp.eq.s32.totalorder %v2977_v39, 2  ;;  %vm1307_vm5 = vcmp.eq.s32.totalorder %v3210_v29, 0  ;;  %vm1310_vm6 = vcmp.eq.s32.totalorder %v3210_v29, 2  ;;  %v2285_v22 = vpop.eup %2284 }
 0x11a   :  { %v1477_v15 = vadd.s32 1, %v3284_v52  ;;  %v1935_v25 = vmul.f32 %v3149_v36, %v3269_v42  ;;  %vm989_vm8 = vcmp.eq.s32.totalorder %v2975_v27, 0  ;;  %vm992_vm9 = vcmp.eq.s32.totalorder %v2975_v27, 2  ;;  %v2287_v18 = vpop.eup %2286 }
 0x11b   :  { %v1390_v35 = vor.u32 %v1389_v16, %v1388_v20  ;;  %v1393_v40 = vshll.u32 %v1392_v62, 23  ;;  %vm1720_vm7 = vcmp.lt.s32.totalorder %v3215_v8, 2  ;;  %vm1724_vm10 = vcmp.eq.s32.totalorder %v3215_v8, 2 }
 0x11c   :  { %v1311_v63 = vxor.u32 2147483648, %v2285_v22  ;;  %v1478_v31 = vsel %vm1476_vm1, %v1477_v15, %v3284_v52  ;;  %vm1721_vm0 = vcmp.eq.s32.totalorder %v3215_v8, 0  ;;  %v1939_v32 = vmul.f32 %v3307_v47, %v3307_v47 }
 0x11d   :  { %vm576_vm2 = vcmp.lt.s32.totalorder %v2977_v39, 2  ;;  %v1308_v61 = vxor.u32 2147483648, %v2287_v18  ;;  %v1394_v34 = vor.u32 4788187, %v1393_v40  ;;  %v1397_v59 = vcvt.s32.f32 %v1390_v35 }
 0x11e   :  { %v1479_v46 = vadd.s32 %v1478_v31, %v1474_v3  ;;  %v578_v7 = vxor.u32 2147483648, %v3253_v14  ;;  %vm988_vm11 = vcmp.lt.s32.totalorder %v2975_v27, 2  ;;  %v1312_v28 = vsel %vm1310_vm6, %v1311_v63, %v2287_v18 }
 0x11f   :  { %v1726_v2 = vsel %vm1724_vm10, %v1311_v63, %v2287_v18  ;;  %v1943_v23 = vmul.f32 %v1935_v25, %v1935_v25  ;;  %v1309_v10 = vsel %vm1307_vm5, %v2285_v22, %v1308_v61  ;;  %v1395_v11 = vand.u32 2147483647, %v1394_v34 }
 0x120   :  { %v1480_v52 = vadd.s32 536870912, %v1479_v46  ;;  %v1723_v6 = vsel %vm1721_vm0, %v2285_v22, %v1308_v61  ;;  %v1313_v19 = vsel %vm1306_vm15, %v1309_v10, %v1312_v28  ;;  %v1401_v4 = vsub.s32 4, %v3220_v9 }
 0x121   :  { %v1727_v20 = vsel %vm1720_vm7, %v1723_v6, %v1726_v2  ;;  %v3339_v26 = vadd.f32 %v1943_v23, %v1939_v32  ;;  %v3343_v41 = vsel %vm1303_vm14, nan, %v1313_v19  ;;  %v1398_v3 = vmul.f32 %v1397_v59, %v1395_v11  ;;  %v3741_v23 = vld [vmem:[#allocation18_spill] sm:$0xff]  ;;  %v3744_v19 = vld [vmem:[#allocation13_spill] sm:$0xff] }
 0x122   :  { %v3345_v16 = vshrl.u32 %v1480_v52, 30  ;;  %v1728_v62 = vsel %vm1303_vm14, nan, %v1727_v20  ;;  %vm1317_vm12 = vcmp.lt.s32.totalorder %v2415_v54, 0  ;;  %v1936_v29 = vmul.f32 %v3155_v13, %v3343_v41  ;;  %v3743_v52 = vld [vmem:[#allocation6_spill] sm:$0xff] }
 0x123   :  { %v1940_v15 = vmul.f32 %v1728_v62, %v1728_v62  ;;  %2288 = vrcp.f32 %v3339_v26  ;;  %v1058_v8 = vmul.f32 %v3202_v0, %v2947_v56  ;;  %v3738_v25 = vand.u32 2147483647, %v2415_v54  ;;  %v3745_v20 = vld [vmem:[#allocation14_spill] sm:$0xff] }
 0x124   :  { %v1399_v35 = vxor.u32 2147483648, %v1398_v3  ;;  %v1482_v40 = vshll.u32 %v3345_v16, 30  ;;  %v1066_v18 = vmul.f32 %v3202_v0, %v2924_v49  ;;  %v1070_v63 = vmul.f32 %v3193_v24, %v2947_v56 }
 0x125   :  { %vm3357_vm13 = vcmp.le.f32.partialorder %v3738_v25, 0.7853982  ;;  %v1402_v31 = vsel %vm1317_vm12, %v1401_v4, %v3220_v9  ;;  %v1944_v32 = vmul.f32 %v1936_v29, %v1936_v29  ;;  %v579_v61 = vsel %vm577_vm3, %v3159_v57, %v578_v7 }
 0x126   :  { %v582_v34 = vsel %vm580_vm4, %v581_v37, %v3253_v14  ;;  %v1400_v59 = vsel %vm1317_vm12, %v1399_v35, %v1398_v3  ;;  %v3375_v28 = vsub.s32 %v1479_v46, %v1482_v40  ;;  %v991_v49 = vsel %vm989_vm8, %v3159_v57, %v578_v7 }
 0x127   :  { %v994_v56 = vsel %vm992_vm9, %v581_v37, %v3253_v14  ;;  %v1403_v24 = vsel %vm3357_vm13, %v2415_v54, %v1400_v59  ;;  %v3388_v0 = vadd.f32 %v1944_v32, %v1940_v15  ;;  %v1035_v9 = vmul.f32 %v3087_v33, %v3067_v5 }
 0x128   :  { %v1404_v46 = vsel %vm3357_vm13, 0, %v1402_v31  ;;  %2290 = vcosq.f32 %v1403_v24  ;;  %v1485_v7 = vsub.s32 0, %v3375_v28  ;;  %vm573_vm14 = vweird.f32 %v2553_v43 }
 0x129   :  { %v583_v57 = vsel %vm576_vm2, %v579_v61, %v582_v34  ;;  %v1062_v14 = vsub.f32 %v3298_v1, %v1058_v8  ;;  %2292 = vsinq.f32 %v1403_v24  ;;  %v995_v37 = vsel %vm988_vm11, %v991_v49, %v994_v56 }
 0x12a   :  { %v3403_v5 = vmul.f32 %v3260_v17, %v3180_v58  ;;  %v1074_v33 = vadd.f32 %v1070_v63, %v1066_v18  ;;  %v2170_v2 = vmin.u32 %v1485_v7, %v3375_v28  ;;  %v3408_v10 = vadd.f32 %v3741_v23, %v2928_v48 }
 0x12b   :  { %v1408_v11 = vadd.s32 3, %v1404_v46  ;;  %2294 = vrcp.f32 %v3388_v0  ;;  %v1975_v39 = vmul.f32 %v3149_v36, %v3149_v36  ;;  %v3415_v27 = vsel %vm573_vm14, nan, %v583_v57 }
 0x12c   :  { %v3742_v58 = vsub.f32 1.0, %v2985_v12  ;;  %2296 = vtanh.f32 %v3743_v52  ;;  %v1487_v6 = vclz %v2170_v2  ;;  %v3424_v48 = vsel %vm573_vm14, nan, %v995_v37 }
 0x12d   :  { %v3427_v4 = vmul.f32 %v3744_v19, %v1062_v14  ;;  %v3430_v3 = vmul.f32 %v3745_v20, %v1062_v14  ;;  %v1976_v29 = vmul.f32 %v3155_v13, %v3155_v13  ;;  %v1023_v12 = vsub.f32 2.0, %v3403_v5 }
 0x12e   :  { %v3419_v1 = vmul.f32 %v3742_v58, %v1035_v9  ;;  %v3438_v15 = vmul.f32 %v3745_v20, %v1074_v33  ;;  %v3441_v43 = vmul.f32 %v3744_v19, %v1074_v33  ;;  %v2171_v8 = vadd.s32 4294967294, %v1487_v6 }
 0x12f   :  { %v3447_v25 = vmul.f32 %v3026_v60, %v3415_v27  ;;  %v1409_v22 = vand.u32 3, %v1408_v11  ;;  %v1971_v35 = vmul.f32 %v3307_v47, %v3269_v42  ;;  %v1979_v40 = vsub.f32 1.0, %v1975_v39 }
 0x130   :  { %v2289_v18 = vpop.eup %2288  ;;  %v3453_v63 = vmul.f32 %v3424_v48, %v3424_v48  ;;  %v1475_v31 = vadd.s32 %v3283_v38, %v3279_v30  ;;  %vm2172_vm15 = vcmp.lt.s32.totalorder %v2171_v8, 0  ;;  %v1822_v32 = vand.u32 3, %v1404_v46 }
 0x131   :  { %v1490_v61 = vsel %vm2172_vm15, 0, %v2171_v8  ;;  %v1955_v34 = vmul.f32 %v2289_v18, %v3339_v26  ;;  %v1972_v59 = vmul.f32 %v1728_v62, %v3343_v41  ;;  %v1980_v49 = vsub.f32 1.0, %v1976_v29 }
 0x132   :  { %vm1407_vm1 = vweird.f32 %v2415_v54  ;;  %v1491_v42 = vsub.s32 32, %v1490_v61  ;;  %v1492_v47 = vshll.u32 %v3375_v28, %v1490_v61  ;;  %v1495_v56 = vsub.s32 4294967266, %v1490_v61 }
 0x133   :  { %vm1410_vm3 = vcmp.lt.s32.totalorder %v1409_v22, 2  ;;  %vm1411_vm4 = vcmp.eq.s32.totalorder %v1409_v22, 0  ;;  %v1959_v24 = vsub.f32 2.0, %v1955_v34  ;;  %v1983_v9 = vmul.f32 %v1979_v40, %v1971_v35 }
 0x134   :  { %vm1414_vm5 = vcmp.eq.s32.totalorder %v1409_v22, 2  ;;  %v1493_v30 = vshrl.u32 %v1475_v31, %v1491_v42  ;;  %v1496_v38 = vadd.s32 127, %v1495_v56  ;;  %vm1823_vm6 = vcmp.lt.s32.totalorder %v1822_v32, 2 }
 0x135   :  { %v2291_v26 = vpop.eup %2290  ;;  %vm1824_vm8 = vcmp.eq.s32.totalorder %v1822_v32, 0  ;;  %vm1827_vm9 = vcmp.eq.s32.totalorder %v1822_v32, 2  ;;  %v1963_v41 = vmul.f32 %v2289_v18, %v1959_v24  ;;  %v1984_v62 = vmul.f32 %v1980_v49, %v1972_v59 }
 0x136   :  { %v2293_v46 = vpop.eup %2292  ;;  %v1415_v7 = vxor.u32 2147483648, %v2291_v26  ;;  %v1494_v57 = vor.u32 %v1493_v30, %v1492_v47  ;;  %v1497_v28 = vshll.u32 %v1496_v38, 23  ;;  %v3462_v14 = vstv %s3434_s17 }
 0x137   :  { %v1412_v37 = vxor.u32 2147483648, %v2293_v46  ;;  %v1967_v33 = vmul.f32 %v3149_v36, %v1963_v41  ;;  %v1987_v2 = vmul.f32 %v1983_v9, %v1963_v41  ;;  %v3466_v23 = vstv %s3443_s18 }
 0x138   :  { %v2295_v11 = vpop.eup %2294  ;;  %v1416_v39 = vsel %vm1414_vm5, %v1415_v7, %v2293_v46  ;;  %v1498_v58 = vor.u32 4788187, %v1497_v28  ;;  %v1501_v6 = vcvt.s32.f32 %v1494_v57  ;;  %v1829_v29 = vsel %vm1827_vm9, %v1415_v7, %v2293_v46 }
 0x139   :  { %v3470_v8 = vpop.eup %2296  ;;  %v1413_v35 = vsel %vm1411_vm4, %v2291_v26, %v1412_v37  ;;  %v1826_v40 = vsel %vm1824_vm8, %v2291_v26, %v1412_v37  ;;  %v1956_v18 = vmul.f32 %v2295_v11, %v3388_v0  ;;  %v1992_v36 = vmul.f32 %v3462_v14, %v1967_v33 }
 0x13a   :  { %v1417_v31 = vsel %vm1410_vm3, %v1413_v35, %v1416_v39  ;;  %v1499_v61 = vand.u32 2147483647, %v1498_v58  ;;  %v1830_v34 = vsel %vm1823_vm6, %v1826_v40, %v1829_v29  ;;  %v1997_v59 = vmul.f32 %v3466_v23, %v1987_v2 }
 0x13b   :  { %v3481_v49 = vsel %vm1407_vm1, nan, %v1417_v31  ;;  %v3485_v42 = vsel %vm1407_vm1, nan, %v1830_v34  ;;  %v1960_v47 = vsub.f32 2.0, %v1956_v18  ;;  %v2005_v0 = vmul.f32 %v3462_v14, %v1987_v2 }
 0x13c   :  { %v1502_v56 = vmul.f32 %v1501_v6, %v1499_v61  ;;  %v1505_v22 = vsub.s32 4, %v3345_v16  ;;  %v1937_v32 = vmul.f32 %v3157_v21, %v3481_v49  ;;  %v1941_v24 = vmul.f32 %v3485_v42, %v3485_v42 }
 0x13d   :  { %vm1421_vm7 = vcmp.lt.s32.totalorder %v2417_v55, 0  ;;  %v1964_v9 = vmul.f32 %v2295_v11, %v1960_v47  ;;  %v2001_v30 = vsub.f32 %v1992_v36, %v1997_v59  ;;  %v2009_v38 = vmul.f32 %v3466_v23, %v1967_v33 }
 0x13e   :  { %v1027_v26 = vmul.f32 %v3260_v17, %v1023_v12  ;;  %v3746_v41 = vand.u32 2147483647, %v2417_v55  ;;  %v1503_v7 = vxor.u32 2147483648, %v1502_v56  ;;  %v1945_v57 = vmul.f32 %v1937_v32, %v1937_v32 }
 0x13f   :  { %v1968_v28 = vmul.f32 %v3155_v13, %v1964_v9  ;;  %v1988_v37 = vmul.f32 %v1984_v62, %v1964_v9  ;;  %v2013_v2 = vadd.f32 %v2009_v38, %v2005_v0  ;;  %v2017_v11 = vadd.f32 1.0, %v2001_v30  ;;  %v3754_v38 = vld [vmem:[#allocation10_spill] sm:$0xff] }
 0x140   :  { %vm3500_vm10 = vcmp.le.f32.partialorder %v3746_v41, 0.7853982  ;;  %v1008_v33 = vmul.f32 %v3447_v25, %v3447_v25  ;;  %v1504_v39 = vsel %vm1421_vm7, %v1503_v7, %v1502_v56  ;;  %v1506_v5 = vsel %vm1421_vm7, %v1505_v22, %v3345_v16  ;;  %v3750_v56 = vld [vmem:[#allocation16_spill] sm:$0xff] }
 0x141   :  { %v3508_v17 = vadd.f32 %v1945_v57, %v1941_v24  ;;  %v1507_v12 = vsel %vm3500_vm10, %v2417_v55, %v1504_v39  ;;  %v1993_v58 = vmul.f32 %v3462_v14, %v1968_v28  ;;  %v1998_v6 = vmul.f32 %v3466_v23, %v1988_v37  ;;  %v3757_v7 = vld [vmem:[#allocation12_spill] sm:$0xff] }
 0x142   :  { %v2006_v13 = vmul.f32 %v3462_v14, %v1988_v37  ;;  %2298 = vcosq.f32 %v1507_v12  ;;  %v2010_v62 = vmul.f32 %v3466_v23, %v1968_v28  ;;  %v2021_v25 = vmul.f32 %v2017_v11, %v2397_v44 }
 0x143   :  { %v2025_v29 = vmul.f32 %v2013_v2, %v2405_v50  ;;  %2300 = vsinq.f32 %v1507_v12  ;;  %v2002_v16 = vsub.f32 %v1993_v58, %v1998_v6  ;;  %v2037_v35 = vmul.f32 %v2013_v2, %v2397_v44 }
 0x144   :  { %v2041_v40 = vmul.f32 %v2017_v11, %v2405_v50  ;;  %v1508_v18 = vsel %vm3500_vm10, 0, %v1506_v5  ;;  %2302 = vrcp.f32 %v3508_v17  ;;  %v2014_v36 = vadd.f32 %v2010_v62, %v2006_v13  ;;  %v3749_v50 = vld [vmem:[#allocation15_spill] sm:$0xff] }
 0x145   :  { %v2029_v31 = vsub.f32 %v2021_v25, %v2025_v29  ;;  %v1088_v61 = vsub.f32 %v3427_v4, %v3438_v15  ;;  %v1100_v34 = vadd.f32 %v3430_v3, %v3441_v43  ;;  %v2018_v59 = vadd.f32 1.0, %v2002_v16  ;;  %v3752_v15 = vld [vmem:[#allocation17_spill] sm:$0xff] }
 0x146   :  { %v2045_v47 = vadd.f32 %v2041_v40, %v2037_v35  ;;  %v3529_v0 = vadd.f32 %v1008_v33, %v3453_v63  ;;  %v2026_v44 = vmul.f32 %v2014_v36, %v2407_v51  ;;  %v3751_v22 = vsub.f32 %v3749_v50, %v3750_v56  ;;  %v3753_v43 = vld [vmem:[#allocation9_spill] sm:$0xff]  ;;  %v3756_v63 = vld [vmem:[#allocation11_spill] sm:$0xff] }
 0x147   :  { %v2038_v24 = vmul.f32 %v2014_v36, %v2399_v45  ;;  %v1512_v9 = vadd.s32 3, %v1508_v18  ;;  %v2022_v30 = vmul.f32 %v2018_v59, %v2399_v45  ;;  %v2042_v4 = vmul.f32 %v2018_v59, %v2407_v51 }
 0x148   :  { %v2033_v32 = vadd.f32 %v2029_v31, %v3751_v22  ;;  %v2049_v3 = vadd.f32 %v2045_v47, %v3752_v15  ;;  %v3755_v41 = vsub.f32 %v3753_v43, %v3754_v38  ;;  %v127_v57 = vadd.f32 %v3757_v7, %v3408_v10 }
 0x149   :  { %v1031_v28 = vmul.f32 %v2882_v53, %v1027_v26  ;;  %v1051_v2 = vmul.f32 %v3419_v1, %v1027_v26  ;;  %v2030_v11 = vsub.f32 %v2022_v30, %v2026_v44  ;;  %v2046_v45 = vadd.f32 %v2042_v4, %v2038_v24 }
 0x14a   :  { %v110_v46 = vadd.f32 %v3756_v63, %v3755_v41  ;;  %v3546_v37 = vadd.f32 1e-08, %v2033_v32  ;;  %v3549_v33 = vadd.f32 1e-08, %v2049_v3  ;;  %2304 = vrcp.f32 %v3529_v0 }
 0x14b   :  { %v1925_v51 = vand.u32 3, %v1508_v18  ;;  %v1977_v39 = vmul.f32 %v3157_v21, %v3157_v21  ;;  %v1513_v10 = vand.u32 3, %v1512_v9  ;;  %v2034_v12 = vadd.f32 %v2030_v11, %v1088_v61 }
 0x14c   :  { %v2061_v5 = vmul.f32 %v3546_v37, %v3546_v37  ;;  %v2050_v53 = vadd.f32 %v2046_v45, %v1100_v34  ;;  %v2065_v58 = vmul.f32 %v3549_v33, %v3549_v33  ;;  %v1055_v1 = vmul.f32 %v1031_v28, %v110_v46 }
 0x14d   :  { %v3558_v26 = vadd.f32 1e-08, %v2034_v12  ;;  %v1059_v62 = vmul.f32 %v1051_v2, %v127_v57  ;;  %v1067_v25 = vmul.f32 %v1051_v2, %v110_v46  ;;  %vm1930_vm0 = vcmp.eq.s32.totalorder %v1925_v51, 2 }
 0x14e   :  { %v3560_v6 = vadd.f32 1e-08, %v2050_v53  ;;  %v2069_v13 = vadd.f32 %v2065_v58, %v2061_v5  ;;  %v1981_v29 = vsub.f32 1.0, %v1977_v39  ;;  %vm1518_vm2 = vcmp.eq.s32.totalorder %v1513_v10, 2 }
 0x14f   :  { %v2299_v16 = vpop.eup %2298  ;;  %v2062_v35 = vmul.f32 %v3558_v26, %v3558_v26  ;;  %vm1515_vm11 = vcmp.eq.s32.totalorder %v1513_v10, 0  ;;  %vm1927_vm12 = vcmp.eq.s32.totalorder %v1925_v51, 0  ;;  %v1973_v31 = vmul.f32 %v3485_v42, %v3481_v49 }
 0x150   :  { %v2066_v40 = vmul.f32 %v3560_v6, %v3560_v6  ;;  %2306 = vrsqrt.f32 %v2069_v13  ;;  %v2301_v18 = vpop.eup %2300  ;;  %v1519_v36 = vxor.u32 2147483648, %v2299_v16  ;;  %vm1514_vm13 = vcmp.lt.s32.totalorder %v1513_v10, 2 }
 0x151   :  { %v2303_v61 = vpop.eup %2302  ;;  %v1516_v34 = vxor.u32 2147483648, %v2301_v18  ;;  %vm1926_vm14 = vcmp.lt.s32.totalorder %v1925_v51, 2  ;;  %vm1511_vm15 = vweird.f32 %v2417_v55  ;;  %v1071_v56 = vmul.f32 %v1031_v28, %v127_v57  ;;  %v3758_v28 = vld [vmem:[#allocation7_spill] sm:$0xff] }
 0x152   :  { %v2070_v59 = vadd.f32 %v2066_v40, %v2062_v35  ;;  %v1520_v47 = vsel %vm1518_vm2, %v1519_v36, %v2301_v18  ;;  %v1932_v44 = vsel %vm1930_vm0, %v1519_v36, %v2301_v18  ;;  %v1957_v50 = vmul.f32 %v2303_v61, %v3508_v17 }
 0x153   :  { %v1517_v22 = vsel %vm1515_vm11, %v2299_v16, %v1516_v34  ;;  %v1929_v32 = vsel %vm1927_vm12, %v2299_v16, %v1516_v34  ;;  %v1985_v49 = vmul.f32 %v1981_v29, %v1973_v31  ;;  %v1063_v41 = vsub.f32 %v1055_v1, %v1059_v62  ;;  %v3759_v16 = vld [vmem:[#allocation8_spill] sm:$0xff] }
 0x154   :  { %2308 = vrsqrt.f32 %v2070_v59  ;;  %v1521_v24 = vsel %vm1514_vm13, %v1517_v22, %v1520_v47  ;;  %v1933_v9 = vsel %vm1926_vm14, %v1929_v32, %v1932_v44  ;;  %v1961_v30 = vsub.f32 2.0, %v1957_v50  ;;  %v3760_v50 = vld [vmem:[#allocation5_spill] sm:$0xff] }
 0x155   :  { %v1522_v42 = vsel %vm1511_vm15, nan, %v1521_v24  ;;  %v1934_v4 = vsel %vm1511_vm15, nan, %v1933_v9  ;;  %v1075_v46 = vadd.f32 %v1071_v56, %v1067_v25  ;;  %v97_v11 = vmul.f32 %v3758_v28, %v3743_v52 }
 0x156   :  { %v1938_v15 = vmul.f32 %v3470_v8, %v1522_v42  ;;  %v1942_v3 = vmul.f32 %v1934_v4, %v1934_v4  ;;  %v1965_v43 = vmul.f32 %v2303_v61, %v1961_v30  ;;  %v1040_v45 = vmul.f32 %v3026_v60, %v3026_v60 }
 0x157   :  { %v2305_v38 = vpop.eup %2304  ;;  %v1080_v53 = vmul.f32 %v3744_v19, %v1063_v41  ;;  %v1093_v62 = vmul.f32 %v3744_v19, %v1075_v46  ;;  %v1097_v25 = vmul.f32 %v3745_v20, %v1063_v41  ;;  %v102_v35 = vmul.f32 %v3759_v16, %v2417_v55 }
 0x158   :  { %v1946_v2 = vmul.f32 %v1938_v15, %v1938_v15  ;;  %v1969_v17 = vmul.f32 %v3157_v21, %v1965_v43  ;;  %v1989_v57 = vmul.f32 %v1985_v49, %v1965_v43  ;;  %v1020_v12 = vmul.f32 %v2305_v38, %v3529_v0 }
 0x159   :  { %v1085_v21 = vmul.f32 %v3745_v20, %v1075_v46  ;;  %v115_v40 = vmul.f32 %v3759_v16, %v3743_v52  ;;  %v119_v36 = vmul.f32 %v3758_v28, %v2417_v55  ;;  %v1036_v31 = vmul.f32 %v3424_v48, %v3415_v27 }
 0x15a   :  { %v1950_v51 = vadd.f32 %v1946_v2, %v1942_v3  ;;  %v1994_v39 = vmul.f32 %v3462_v14, %v1969_v17  ;;  %v1999_v5 = vmul.f32 %v3466_v23, %v1989_v57  ;;  %v2007_v10 = vmul.f32 %v3462_v14, %v1989_v57 }
 0x15b   :  { %v2011_v58 = vmul.f32 %v3466_v23, %v1969_v17  ;;  %v1044_v61 = vsub.f32 1.0, %v1040_v45  ;;  %v1024_v47 = vsub.f32 2.0, %v1020_v12  ;;  %v1089_v32 = vsub.f32 %v1080_v53, %v1085_v21 }
 0x15c   :  { %2310 = vrcp.f32 %v1950_v51  ;;  %v2003_v29 = vsub.f32 %v1994_v39, %v1999_v5  ;;  %v1101_v24 = vadd.f32 %v1097_v25, %v1093_v62  ;;  %v106_v49 = vsub.f32 %v97_v11, %v102_v35 }
 0x15d   :  { %v2307_v1 = vpop.eup %2306  ;;  %v2015_v0 = vadd.f32 %v2011_v58, %v2007_v10  ;;  %v123_v27 = vadd.f32 %v119_v36, %v115_v40  ;;  %v1028_v48 = vmul.f32 %v2305_v38, %v1024_v47  ;;  %v1048_v43 = vmul.f32 %v1044_v61, %v1036_v31 }
 0x15e   :  { %v2077_v18 = vmul.f32 %v2307_v1, %v2069_v13  ;;  %v2019_v34 = vadd.f32 1.0, %v2003_v29  ;;  %v1978_v41 = vmul.f32 %v3470_v8, %v3470_v8  ;;  %v111_v28 = vadd.f32 %v3756_v63, %v106_v49 }
 0x15f   :  { %v2027_v44 = vmul.f32 %v2015_v0, %v2415_v54  ;;  %v2039_v56 = vmul.f32 %v2015_v0, %v3760_v50  ;;  %v1052_v11 = vmul.f32 %v1048_v43, %v1028_v48  ;;  %v1974_v45 = vmul.f32 %v1934_v4, %v1522_v42 }
 0x160   :  { %2312 = vtanh.f32 %v2077_v18  ;;  %v2023_v9 = vmul.f32 %v2019_v34, %v3760_v50  ;;  %v2043_v13 = vmul.f32 %v2019_v34, %v2415_v54  ;;  %v128_v54 = vadd.f32 %v3757_v7, %v123_v27 }
 0x161   :  { %v2309_v22 = vpop.eup %2308  ;;  %v1982_v38 = vsub.f32 1.0, %v1978_v41  ;;  %v1068_v62 = vmul.f32 %v1052_v11, %v111_v28 }
 0x162   :  { %v2078_v30 = vmul.f32 %v2309_v22, %v2070_v59  ;;  %v2031_v15 = vsub.f32 %v2023_v9, %v2027_v44  ;;  %v2047_v3 = vadd.f32 %v2043_v13, %v2039_v56  ;;  %v1032_v59 = vmul.f32 %v3026_v60, %v1028_v48 }
 0x163   :  { %v1060_v58 = vmul.f32 %v1052_v11, %v128_v54  ;;  %v1986_v29 = vmul.f32 %v1982_v38, %v1974_v45 }
 0x164   :  { %2314 = vtanh.f32 %v2078_v30  ;;  %v2035_v46 = vadd.f32 %v2031_v15, %v1089_v32  ;;  %v2051_v2 = vadd.f32 %v2047_v3, %v1101_v24  ;;  %v1056_v21 = vmul.f32 %v1032_v59, %v111_v28 }
 0x165   :  { %v1072_v63 = vmul.f32 %v1032_v59, %v128_v54 }
 0x166   :  { %v3600_v17 = vadd.f32 1e-08, %v2035_v46  ;;  %v3602_v57 = vadd.f32 1e-08, %v2051_v2  ;;  %v1064_v4 = vsub.f32 %v1056_v21, %v1060_v58 }
 0x167   :  { %v1076_v16 = vadd.f32 %v1072_v63, %v1068_v62 }
 0x168   :  { %v2063_v39 = vmul.f32 %v3600_v17, %v3600_v17  ;;  %v2067_v5 = vmul.f32 %v3602_v57, %v3602_v57  ;;  %v1098_v50 = vmul.f32 %v3745_v20, %v1064_v4 }
 0x169   :  { %v2311_v10 = vpop.eup %2310  ;;  %v1086_v61 = vmul.f32 %v3745_v20, %v1076_v16  ;;  %v1094_v44 = vmul.f32 %v3744_v19, %v1076_v16 }
 0x16a   :  { %v1958_v12 = vmul.f32 %v2311_v10, %v1950_v51  ;;  %v2071_v53 = vadd.f32 %v2067_v5, %v2063_v39 }
 0x16b   :  { %v1102_v32 = vadd.f32 %v1098_v50, %v1094_v44 }
 0x16c   :  { %v1962_v7 = vsub.f32 2.0, %v1958_v12  ;;  %2316 = vrsqrt.f32 %v2071_v53 }
 0x16d   :  { %v2313_v25 = vpop.eup %2312 }
 0x16e   :  { %v2085_v60 = vmul.f32 %v2313_v25, %v2307_v1  ;;  %v1966_v42 = vmul.f32 %v2311_v10, %v1962_v7 }
 0x170   :  { %v2089_v35 = vmul.f32 %v2085_v60, %v3546_v37  ;;  %v2093_v40 = vmul.f32 %v2085_v60, %v3549_v33  ;;  %v1970_v51 = vmul.f32 %v3470_v8, %v1966_v42  ;;  %v1990_v18 = vmul.f32 %v1986_v29, %v1966_v42 }
 0x171   :  { %v2315_v0 = vpop.eup %2314  ;;  %v1081_v8 = vmul.f32 %v3744_v19, %v1064_v4 }
 0x172   :  { %v2086_v36 = vmul.f32 %v2315_v0, %v2309_v22  ;;  %2097 = vst [vmem:[%s3657_s3] sm:$0xff] %v2089_v35  ;;  %2101 = vst [vmem:[%s3658_s4] sm:$0xff] %v2093_v40  ;;  %v1995_v1 = vmul.f32 %v3462_v14, %v1970_v51  ;;  %v2000_v31 = vmul.f32 %v3466_v23, %v1990_v18 }
 0x173   :  { %v2008_v37 = vmul.f32 %v3462_v14, %v1990_v18  ;;  %v2012_v33 = vmul.f32 %v3466_v23, %v1970_v51 }
 0x174   :  { %v2090_v34 = vmul.f32 %v2086_v36, %v3558_v26  ;;  %v2094_v47 = vmul.f32 %v2086_v36, %v3560_v6  ;;  %v2004_v56 = vsub.f32 %v1995_v1, %v2000_v31  ;;  %v1090_v6 = vsub.f32 %v1081_v8, %v1086_v61 }
 0x175   :  { %v2016_v22 = vadd.f32 %v2012_v33, %v2008_v37 }
 0x176   :  { %2098 = vst [vmem:[%s3657_s3 + $0x8] sm:$0xff] %v2090_v34  ;;  %2102 = vst [vmem:[%s3658_s4 + $0x8] sm:$0xff] %v2094_v47  ;;  %v2020_v14 = vadd.f32 1.0, %v2004_v56 }
 0x177   :  { %v2028_v23 = vmul.f32 %v2016_v22, %v2417_v55  ;;  %v2040_v26 = vmul.f32 %v2016_v22, %v3743_v52 }
 0x178   :  { %v2024_v19 = vmul.f32 %v2020_v14, %v3743_v52  ;;  %v2044_v20 = vmul.f32 %v2020_v14, %v2417_v55 }
 0x179   :  { %v2317_v24 = vpop.eup %2316 }
 0x17a   :  { %v2032_v9 = vsub.f32 %v2024_v19, %v2028_v23  ;;  %v2048_v13 = vadd.f32 %v2044_v20, %v2040_v26  ;;  %v2079_v30 = vmul.f32 %v2317_v24, %v2071_v53 }
 0x17c   :  { %v2036_v49 = vadd.f32 %v2032_v9, %v1090_v6  ;;  %v2052_v15 = vadd.f32 %v2048_v13, %v1102_v32  ;;  %2318 = vtanh.f32 %v2079_v30 }
 0x17e   :  { %v2056_v3 = vadd.f32 1e-08, %v2036_v49  ;;  %v2060_v27 = vadd.f32 1e-08, %v2052_v15 }
 0x180   :  { %v2064_v48 = vmul.f32 %v2056_v3, %v2056_v3  ;;  %v2068_v43 = vmul.f32 %v2060_v27, %v2060_v27 }
 0x182   :  { %v2072_v41 = vadd.f32 %v2068_v43, %v2064_v48 }
 0x184   :  { %2320 = vrsqrt.f32 %v2072_v41 }
 0x189   :  { %v2319_v46 = vpop.eup %2318 }
 0x18a   :  { %v2087_v2 = vmul.f32 %v2319_v46, %v2317_v24 }
 0x18c   :  { %v2091_v28 = vmul.f32 %v2087_v2, %v3600_v17  ;;  %v2095_v52 = vmul.f32 %v2087_v2, %v3602_v57 }
 0x18e   :  { %2099 = vst [vmem:[%s3657_s3 + $0x10] sm:$0xff] %v2091_v28  ;;  %2103 = vst [vmem:[%s3658_s4 + $0x10] sm:$0xff] %v2095_v52 }
 0x191   :  { %v2321_v55 = vpop.eup %2320 }
 0x192   :  { %v2080_v54 = vmul.f32 %v2321_v55, %v2072_v41 }
 0x194   :  { %2322 = vtanh.f32 %v2080_v54 }
 0x1a1   :  { %v2323_v59 = vpop.eup %2322 }
 0x1a2   :  { %v2088_v11 = vmul.f32 %v2323_v59, %v2321_v55 }
 0x1a4   :  { %v2092_v45 = vmul.f32 %v2088_v11, %v2056_v3  ;;  %v2096_v38 = vmul.f32 %v2088_v11, %v2060_v27 }
 0x1a6   :  { %2100 = vst [vmem:[%s3657_s3 + $0x18] sm:$0xff] %v2092_v45  ;;  %2104 = vst [vmem:[%s3658_s4 + $0x18] sm:$0xff] %v2096_v38 }
 0x1a7   :  { %2113 = vsyncpa [#allocation3], 1 }

</bundles_post_ra>
